<compile_context>
chip_gen: v5e
topology: v5e:2x2
jax: 0.10.0
libtpu: 0.0.40
codegen_flags: <defaults>
</compile_context>

<pallas_src>
import math
from functools import partial

import numpy as np
import jax
import jax.numpy as jnp
from jax import lax
from jax.experimental import pallas as pl
from jax.experimental.pallas import tpu as pltpu


def _upsample_conv_kernel(x_ref, top_ref, bot_ref, w_ref, b_ref, o_ref):
    """Subpixel upsample+conv3x3 for one (batch, row-block) grid step.

    x_ref:   (tr, W+2, C)   bf16  center rows of the col-padded input
    top_ref: (W+2, C)       bf16  row above the block (clamped; zeroed at rb==0)
    bot_ref: (W+2, C)       bf16  row below the block (clamped; zeroed at rb==last)
    w_ref:   (4, 4C, C)     bf16  per-phase folded 2x2 weights (phase = ri*2+sj)
    b_ref:   (1, C)         f32   bias
    o_ref:   (2, 2, tr*W, C)      phase-separated output rows
    """
    tr, Wp, C = x_ref.shape
    W = Wp - 2
    rb = pl.program_id(1)
    nrb = pl.num_programs(1)

    # Conv zero padding for the first / last output rows of the image.
    top = top_ref[...]
    top = jnp.where(rb > 0, top, jnp.zeros_like(top))
    bot = bot_ref[...]
    bot = jnp.where(rb < nrb - 1, bot, jnp.zeros_like(bot))

    # (tr+2, W+2, C) row window; rows are a major (untiled) dim -> cheap concat.
    win = jnp.concatenate([top[None], x_ref[...], bot[None]], axis=0)

    # Hoist the three column-shifted views (2 sublane relayouts total), already
    # flattened to 2-D so every later slice / dot is MXU-shaped.
    cols = [win[:, c:c + W, :].reshape((tr + 2) * W, C) for c in range(3)]

    bias = b_ref[...].astype(jnp.float32)                        # (1, C)

    for ri in range(2):                                          # output row phase
        for sj in range(2):                                      # output col phase
            # 2x2 taps for this phase, concatenated along the contraction dim:
            # K = 4C -> one wide MXU dot, accumulation stays inside the MXU.
            taps = [cols[sj + b][(ri + a) * W:(ri + a + tr) * W]
                    for a in range(2) for b in range(2)]         # 4 x (tr*W, C)
            lhs = jnp.concatenate(taps, axis=-1)                 # (tr*W, 4C)
            acc = jnp.dot(lhs, w_ref[ri * 2 + sj],
                          preferred_element_type=jnp.float32)    # (tr*W, C)
            o_ref[ri, sj] = (acc + bias).astype(o_ref.dtype)


def _pick_row_block(H, W, C, out_itemsize):
    """Input rows per grid step, from (8,128)-tile-padded footprints (incl. the
    in-kernel temporaries), targeting ~10 MiB per step: safe on v7x's 64 MiB
    VMEM while amortizing the ~0.35us per-grid-step overhead on v5e/v6e."""
    lanes = -(-C // 128) * 128
    sub = lambda n: -(-n // 8) * 8
    in_row = sub(W + 2) * lanes * 2               # bf16 input row (+ window copy)
    tmp_row = 3 * sub(W) * lanes * 2              # hoisted col-shifted views
    op_row = sub(W) * 4 * lanes * 2               # one phase's (tr*W, 4C) operand
    acc_row = sub(W) * lanes * 4                  # one phase's f32 result
    out_row = 4 * sub(W) * lanes * out_itemsize   # all four output phases
    per_row = 3 * in_row + tmp_row + op_row + acc_row + 2 * out_row
    budget = 10 * 1024 * 1024
    tr = min(H, max(1, budget // per_row), max(1, 4096 // max(W, 1)))
    return max(1, int(tr))


def _vmem_limit_bytes():
    # Generation aware: ~3/4 of physical VMEM, capped at 96 MiB
    # (v5e/v6e: 96 of 128 MiB; v7x: 48 of 64 MiB).
    try:
        cap = int(pltpu.get_tpu_info().vmem_capacity_bytes)
    except Exception:
        cap = 64 * 1024 * 1024
    return int(min(cap * 3 // 4, 96 * 1024 * 1024))


@partial(jax.jit, static_argnames=("out_dtype",))
def upsample_forward(x_nchw, weight_oihw, bias, *, out_dtype=jnp.float32):
    """Upsample.forward: Conv2d(C, C, 3, padding=1)(nearest_2x(x)).

    x_nchw:      (B, C, H, W)   f32
    weight_oihw: (C, C, 3, 3)   f32   (PyTorch OIHW layout)
    bias:        (C,)           f32
    returns:     (B, C, 2H, 2W) out_dtype
    """
    B, C, H, W = x_nchw.shape
    Ho, Wo = 2 * H, 2 * W
    Wp = W + 2
    out_itemsize = np.dtype(out_dtype).itemsize

    tr = _pick_row_block(H, W, C, out_itemsize)
    if B == 1 and H > 1:
        tr = min(tr, (H + 1) // 2)        # keep >= 2 row blocks for the 2nd TensorCore
    m = 8 // math.gcd(W, 8)               # keep tr*W a multiple of 8 (sublane tiling)
    tr = max(m, (tr // m) * m)
    H_pad = pl.cdiv(H, tr) * tr
    nrb = H_pad // tr

    # ---- glue: NCHW -> NHWC bf16, conv column zero-pad, row pad to tr multiple.
    # TODO(synk): if the surrounding UNet consumes NHWC bf16 activations, drop the
    # entry/exit transposes — each is a full extra HBM pass over the activation.
    x = jnp.transpose(x_nchw, (0, 2, 3, 1)).astype(jnp.bfloat16)        # (B,H,W,C)
    x = jnp.pad(x, ((0, 0), (0, H_pad - H), (1, 1), (0, 0)))            # (B,H_pad,Wp,C)

    # ---- fold nearest-2x into per-phase 2x2 weights (summed in f32, then bf16).
    # comb[phase, folded_tap, original_tap] for rows and columns alike.
    w = jnp.transpose(weight_oihw, (2, 3, 1, 0)).astype(jnp.float32)    # (ky,kx,Ci,Co)
    comb = jnp.array([[[1., 0., 0.], [0., 1., 1.]],
                      [[1., 1., 0.], [0., 0., 1.]]], jnp.float32)       # (2,2,3)
    w_eff = jnp.einsum('iad,jbe,deco->ijabco', comb, comb, w)           # (2,2,2,2,Ci,Co)
    w_eff = w_eff.reshape(4, 4 * C, C).astype(jnp.bfloat16)
    b2 = bias.reshape(1, C).astype(jnp.float32)

    cost = pl.CostEstimate(
        flops=2 * B * Ho * Wo * 4 * C * C,                 # 4 effective taps / output px
        transcendentals=0,
        bytes_accessed=(B * H_pad * Wp * C * 2             # input (bf16)
                        + 16 * C * C * 2 + 4 * C           # weights + bias
                        + B * 4 * H_pad * W * C * out_itemsize))

    out = pl.pallas_call(
        _upsample_conv_kernel,
        out_shape=jax.ShapeDtypeStruct((B, 2, 2, H_pad * W, C), out_dtype),
        grid=(B, nrb),
        in_specs=[
            pl.BlockSpec((None, tr, Wp, C), lambda b, r: (b, r, 0, 0)),
            pl.BlockSpec((None, None, Wp, C),
                         lambda b, r: (b, jnp.maximum(r * tr - 1, 0), 0, 0)),
            pl.BlockSpec((None, None, Wp, C),
                         lambda b, r: (b, jnp.minimum((r + 1) * tr, H_pad - 1), 0, 0)),
            pl.BlockSpec((4, 4 * C, C), lambda b, r: (0, 0, 0)),
            pl.BlockSpec((1, C), lambda b, r: (0, 0)),
        ],
        out_specs=pl.BlockSpec((None, 2, 2, tr * W, C), lambda b, r: (b, 0, 0, r, 0)),
        compiler_params=pltpu.CompilerParams(
            dimension_semantics=("parallel", "parallel"),
            vmem_limit_bytes=_vmem_limit_bytes()),
        cost_estimate=cost,
    )(x, x, x, w_eff, b2)

    # ---- glue: one transpose does both the pixel shuffle and NHWC -> NCHW.
    out = out.reshape(B, 2, 2, H_pad, W, C)[:, :, :, :H]      # (B, ri, sj, H, W, C)
    out = jnp.transpose(out, (0, 5, 3, 1, 4, 2))              # (B, C, H, ri, W, sj)
    return out.reshape(B, C, Ho, Wo)


def _reference(x, weight, bias):
    up = jnp.repeat(jnp.repeat(x, 2, axis=2), 2, axis=3)
    y = lax.conv_general_dilated(
        up, weight, window_strides=(1, 1), padding=[(1, 1), (1, 1)],
        dimension_numbers=("NCHW", "OIHW", "NCHW"))
    return y + bias[None, :, None, None]


def _run_case(key, B, C, H, W):
    k_x, k_w, k_b = jax.random.split(key, 3)
    x = jax.random.normal(k_x, (B, C, H, W), dtype=jnp.float32)
    fan_in = C * 9
    bound = 1.0 / (fan_in ** 0.5)
    weight = jax.random.uniform(k_w, (C, C, 3, 3), jnp.float32, -bound, bound)
    bias = jax.random.uniform(k_b, (C,), jnp.float32, -bound, bound)

    y = jax.block_until_ready(upsample_forward(x, weight, bias))
    y_ref = _reference(x, weight, bias)

    assert y.shape == (B, C, 2 * H, 2 * W), y.shape
    # bf16 operands with f32 accumulation -> loosened tolerance vs f32 reference.
    assert jnp.allclose(y, y_ref, rtol=2e-2, atol=2e-2), float(
        jnp.max(jnp.abs(y - y_ref)))


if __name__ == "__main__":
    key = jax.random.PRNGKey(0)
    k1, k2 = jax.random.split(key)

    # Primary small case matching the module spec (dim = 4).
    _run_case(k1, B=2, C=4, H=16, W=16)
    # Ragged case: exercises row padding, halo masking, non-multiple-of-8 width.
    _run_case(k2, B=1, C=8, H=7, W=12)

    print("KERNEL_OK")
</pallas_src>

<mosaic_0001>
module attributes {stable_mosaic.version = 11 : i64} {
  func.func @_upsample_conv_kernel(%arg0: i32, %arg1: i32, %arg2: memref<1x16x18x4xbf16, #tpu.memory_space<vmem>>, %arg3: memref<1x1x18x4xbf16, #tpu.memory_space<vmem>>, %arg4: memref<1x1x18x4xbf16, #tpu.memory_space<vmem>>, %arg5: memref<4x16x4xbf16, #tpu.memory_space<vmem>>, %arg6: memref<1x4xf32, #tpu.memory_space<vmem>>, %arg7: memref<1x2x2x256x4xf32, #tpu.memory_space<vmem>>) attributes {dimension_semantics = [#tpu.dimension_semantics<parallel>, #tpu.dimension_semantics<parallel>], iteration_bounds = array<i64: 2, 1>, scalar_prefetch = 0 : i64, scratch_operands = 0 : i64, tpu.core_type = #tpu.core_type<tc>, window_params = [{transform_indices = @transform_0, window_bounds = array<i64: 1, 16, 18, 4>}, {transform_indices = @transform_1, window_bounds = array<i64: 1, 1, 18, 4>}, {transform_indices = @transform_2, window_bounds = array<i64: 1, 1, 18, 4>}, {pipeline_mode = #tpu.pipeline_mode<synchronous>, transform_indices = @transform_3, window_bounds = array<i64: 4, 16, 4>}, {pipeline_mode = #tpu.pipeline_mode<synchronous>, transform_indices = @transform_4, window_bounds = array<i64: 1, 4>}, {transform_indices = @transform_5, window_bounds = array<i64: 1, 2, 2, 256, 4>}]} {
    %c0 = arith.constant 0 : index
    %c0_0 = arith.constant 0 : index
    %c0_1 = arith.constant 0 : index
    %c0_2 = arith.constant 0 : index
    %0 = vector.load %arg3[%c0, %c0_0, %c0_1, %c0_2] : memref<1x1x18x4xbf16, #tpu.memory_space<vmem>>, vector<1x1x18x4xbf16>
    %1 = vector.shape_cast %0 : vector<1x1x18x4xbf16> to vector<18x4xbf16>
    %c0_i32 = arith.constant 0 : i32
    %2 = arith.cmpi sgt, %arg1, %c0_i32 : i32
    %cst = arith.constant 0.000000e+00 : bf16
    %3 = vector.broadcast %cst : bf16 to vector<18x4xbf16>
    %4 = arith.select %2, %1, %3 : vector<18x4xbf16>
    %c0_3 = arith.constant 0 : index
    %c0_4 = arith.constant 0 : index
    %c0_5 = arith.constant 0 : index
    %c0_6 = arith.constant 0 : index
    %5 = vector.load %arg4[%c0_3, %c0_4, %c0_5, %c0_6] : memref<1x1x18x4xbf16, #tpu.memory_space<vmem>>, vector<1x1x18x4xbf16>
    %6 = vector.shape_cast %5 : vector<1x1x18x4xbf16> to vector<18x4xbf16>
    %c0_i32_7 = arith.constant 0 : i32
    %7 = arith.cmpi slt, %arg1, %c0_i32_7 : i32
    %cst_8 = arith.constant 0.000000e+00 : bf16
    %8 = vector.broadcast %cst_8 : bf16 to vector<18x4xbf16>
    %9 = arith.select %7, %6, %8 : vector<18x4xbf16>
    %10 = vector.shape_cast %4 : vector<18x4xbf16> to vector<1x18x4xbf16>
    %c0_9 = arith.constant 0 : index
    %c0_10 = arith.constant 0 : index
    %c0_11 = arith.constant 0 : index
    %c0_12 = arith.constant 0 : index
    %11 = vector.load %arg2[%c0_9, %c0_10, %c0_11, %c0_12] : memref<1x16x18x4xbf16, #tpu.memory_space<vmem>>, vector<1x16x18x4xbf16>
    %12 = vector.shape_cast %11 : vector<1x16x18x4xbf16> to vector<16x18x4xbf16>
    %13 = vector.shape_cast %9 : vector<18x4xbf16> to vector<1x18x4xbf16>
    %14 = tpu.concatenate %10, %12, %13 in 0 : vector<1x18x4xbf16>, vector<16x18x4xbf16>, vector<1x18x4xbf16> -> vector<18x18x4xbf16>
    %15 = vector.extract_strided_slice %14 {offsets = [0, 0, 0], sizes = [18, 16, 4], strides = [1, 1, 1]} : vector<18x18x4xbf16> to vector<18x16x4xbf16>
    %16 = vector.shape_cast %15 : vector<18x16x4xbf16> to vector<288x4xbf16>
    %17 = vector.extract_strided_slice %14 {offsets = [0, 1, 0], sizes = [18, 16, 4], strides = [1, 1, 1]} : vector<18x18x4xbf16> to vector<18x16x4xbf16>
    %18 = vector.shape_cast %17 : vector<18x16x4xbf16> to vector<288x4xbf16>
    %19 = vector.extract_strided_slice %14 {offsets = [0, 2, 0], sizes = [18, 16, 4], strides = [1, 1, 1]} : vector<18x18x4xbf16> to vector<18x16x4xbf16>
    %20 = vector.shape_cast %19 : vector<18x16x4xbf16> to vector<288x4xbf16>
    %c0_13 = arith.constant 0 : index
    %c0_14 = arith.constant 0 : index
    %21 = vector.load %arg6[%c0_13, %c0_14] : memref<1x4xf32, #tpu.memory_space<vmem>>, vector<1x4xf32>
    %22 = vector.extract_strided_slice %16 {offsets = [0, 0], sizes = [256, 4], strides = [1, 1]} : vector<288x4xbf16> to vector<256x4xbf16>
    %23 = vector.extract_strided_slice %18 {offsets = [0, 0], sizes = [256, 4], strides = [1, 1]} : vector<288x4xbf16> to vector<256x4xbf16>
    %24 = vector.extract_strided_slice %16 {offsets = [16, 0], sizes = [256, 4], strides = [1, 1]} : vector<288x4xbf16> to vector<256x4xbf16>
    %25 = vector.extract_strided_slice %18 {offsets = [16, 0], sizes = [256, 4], strides = [1, 1]} : vector<288x4xbf16> to vector<256x4xbf16>
    %26 = tpu.concatenate %22, %23, %24, %25 in 1 : vector<256x4xbf16>, vector<256x4xbf16>, vector<256x4xbf16>, vector<256x4xbf16> -> vector<256x16xbf16>
    %c0_15 = arith.constant 0 : index
    %c0_16 = arith.constant 0 : index
    %c0_17 = arith.constant 0 : index
    %27 = vector.load %arg5[%c0_15, %c0_16, %c0_17] : memref<4x16x4xbf16, #tpu.memory_space<vmem>>, vector<1x16x4xbf16>
    %28 = vector.shape_cast %27 : vector<1x16x4xbf16> to vector<16x4xbf16>
    %cst_18 = arith.constant dense<0.000000e+00> : vector<256x4xf32>
    %29 = tpu.matmul %26, %28, %cst_18 {dimension_numbers = #tpu.dot_dimension_numbers<[1], [0], [0], [1], [0, 0, 1, 1], [], []>} : vector<256x16xbf16>, vector<16x4xbf16>, vector<256x4xf32> -> vector<256x4xf32>
    %30 = vector.broadcast %21 : vector<1x4xf32> to vector<256x4xf32>
    %31 = arith.addf %29, %30 : vector<256x4xf32>
    %c0_19 = arith.constant 0 : index
    %c0_20 = arith.constant 0 : index
    %c0_21 = arith.constant 0 : index
    %c0_22 = arith.constant 0 : index
    %c0_23 = arith.constant 0 : index
    %32 = vector.load %arg7[%c0_19, %c0_20, %c0_21, %c0_22, %c0_23] : memref<1x2x2x256x4xf32, #tpu.memory_space<vmem>>, vector<1x1x1x256x4xf32>
    %33 = vector.shape_cast %32 : vector<1x1x1x256x4xf32> to vector<256x4xf32>
    %34 = vector.shape_cast %31 : vector<256x4xf32> to vector<1x1x1x256x4xf32>
    tpu.vector_store %arg7[%c0_19, %c0_20, %c0_21, %c0_22, %c0_23], %34 {strides = array<i32>} : memref<1x2x2x256x4xf32, #tpu.memory_space<vmem>>, vector<1x1x1x256x4xf32>,
    %35 = vector.extract_strided_slice %18 {offsets = [0, 0], sizes = [256, 4], strides = [1, 1]} : vector<288x4xbf16> to vector<256x4xbf16>
    %36 = vector.extract_strided_slice %20 {offsets = [0, 0], sizes = [256, 4], strides = [1, 1]} : vector<288x4xbf16> to vector<256x4xbf16>
    %37 = vector.extract_strided_slice %18 {offsets = [16, 0], sizes = [256, 4], strides = [1, 1]} : vector<288x4xbf16> to vector<256x4xbf16>
    %38 = vector.extract_strided_slice %20 {offsets = [16, 0], sizes = [256, 4], strides = [1, 1]} : vector<288x4xbf16> to vector<256x4xbf16>
    %39 = tpu.concatenate %35, %36, %37, %38 in 1 : vector<256x4xbf16>, vector<256x4xbf16>, vector<256x4xbf16>, vector<256x4xbf16> -> vector<256x16xbf16>
    %c1 = arith.constant 1 : index
    %c0_24 = arith.constant 0 : index
    %c0_25 = arith.constant 0 : index
    %40 = vector.load %arg5[%c1, %c0_24, %c0_25] : memref<4x16x4xbf16, #tpu.memory_space<vmem>>, vector<1x16x4xbf16>
    %41 = vector.shape_cast %40 : vector<1x16x4xbf16> to vector<16x4xbf16>
    %cst_26 = arith.constant dense<0.000000e+00> : vector<256x4xf32>
    %42 = tpu.matmul %39, %41, %cst_26 {dimension_numbers = #tpu.dot_dimension_numbers<[1], [0], [0], [1], [0, 0, 1, 1], [], []>} : vector<256x16xbf16>, vector<16x4xbf16>, vector<256x4xf32> -> vector<256x4xf32>
    %43 = vector.broadcast %21 : vector<1x4xf32> to vector<256x4xf32>
    %44 = arith.addf %42, %43 : vector<256x4xf32>
    %c0_27 = arith.constant 0 : index
    %c0_28 = arith.constant 0 : index
    %c1_29 = arith.constant 1 : index
    %c0_30 = arith.constant 0 : index
    %c0_31 = arith.constant 0 : index
    %45 = vector.load %arg7[%c0_27, %c0_28, %c1_29, %c0_30, %c0_31] : memref<1x2x2x256x4xf32, #tpu.memory_space<vmem>>, vector<1x1x1x256x4xf32>
    %46 = vector.shape_cast %45 : vector<1x1x1x256x4xf32> to vector<256x4xf32>
    %47 = vector.shape_cast %44 : vector<256x4xf32> to vector<1x1x1x256x4xf32>
    tpu.vector_store %arg7[%c0_27, %c0_28, %c1_29, %c0_30, %c0_31], %47 {strides = array<i32>} : memref<1x2x2x256x4xf32, #tpu.memory_space<vmem>>, vector<1x1x1x256x4xf32>,
    %48 = vector.extract_strided_slice %16 {offsets = [16, 0], sizes = [256, 4], strides = [1, 1]} : vector<288x4xbf16> to vector<256x4xbf16>
    %49 = vector.extract_strided_slice %18 {offsets = [16, 0], sizes = [256, 4], strides = [1, 1]} : vector<288x4xbf16> to vector<256x4xbf16>
    %50 = vector.extract_strided_slice %16 {offsets = [32, 0], sizes = [256, 4], strides = [1, 1]} : vector<288x4xbf16> to vector<256x4xbf16>
    %51 = vector.extract_strided_slice %18 {offsets = [32, 0], sizes = [256, 4], strides = [1, 1]} : vector<288x4xbf16> to vector<256x4xbf16>
    %52 = tpu.concatenate %48, %49, %50, %51 in 1 : vector<256x4xbf16>, vector<256x4xbf16>, vector<256x4xbf16>, vector<256x4xbf16> -> vector<256x16xbf16>
    %c2 = arith.constant 2 : index
    %c0_32 = arith.constant 0 : index
    %c0_33 = arith.constant 0 : index
    %53 = vector.load %arg5[%c2, %c0_32, %c0_33] : memref<4x16x4xbf16, #tpu.memory_space<vmem>>, vector<1x16x4xbf16>
    %54 = vector.shape_cast %53 : vector<1x16x4xbf16> to vector<16x4xbf16>
    %cst_34 = arith.constant dense<0.000000e+00> : vector<256x4xf32>
    %55 = tpu.matmul %52, %54, %cst_34 {dimension_numbers = #tpu.dot_dimension_numbers<[1], [0], [0], [1], [0, 0, 1, 1], [], []>} : vector<256x16xbf16>, vector<16x4xbf16>, vector<256x4xf32> -> vector<256x4xf32>
    %56 = vector.broadcast %21 : vector<1x4xf32> to vector<256x4xf32>
    %57 = arith.addf %55, %56 : vector<256x4xf32>
    %c0_35 = arith.constant 0 : index
    %c1_36 = arith.constant 1 : index
    %c0_37 = arith.constant 0 : index
    %c0_38 = arith.constant 0 : index
    %c0_39 = arith.constant 0 : index
    %58 = vector.load %arg7[%c0_35, %c1_36, %c0_37, %c0_38, %c0_39] : memref<1x2x2x256x4xf32, #tpu.memory_space<vmem>>, vector<1x1x1x256x4xf32>
    %59 = vector.shape_cast %58 : vector<1x1x1x256x4xf32> to vector<256x4xf32>
    %60 = vector.shape_cast %57 : vector<256x4xf32> to vector<1x1x1x256x4xf32>
    tpu.vector_store %arg7[%c0_35, %c1_36, %c0_37, %c0_38, %c0_39], %60 {strides = array<i32>} : memref<1x2x2x256x4xf32, #tpu.memory_space<vmem>>, vector<1x1x1x256x4xf32>,
    %61 = vector.extract_strided_slice %18 {offsets = [16, 0], sizes = [256, 4], strides = [1, 1]} : vector<288x4xbf16> to vector<256x4xbf16>
    %62 = vector.extract_strided_slice %20 {offsets = [16, 0], sizes = [256, 4], strides = [1, 1]} : vector<288x4xbf16> to vector<256x4xbf16>
    %63 = vector.extract_strided_slice %18 {offsets = [32, 0], sizes = [256, 4], strides = [1, 1]} : vector<288x4xbf16> to vector<256x4xbf16>
    %64 = vector.extract_strided_slice %20 {offsets = [32, 0], sizes = [256, 4], strides = [1, 1]} : vector<288x4xbf16> to vector<256x4xbf16>
    %65 = tpu.concatenate %61, %62, %63, %64 in 1 : vector<256x4xbf16>, vector<256x4xbf16>, vector<256x4xbf16>, vector<256x4xbf16> -> vector<256x16xbf16>
    %c3 = arith.constant 3 : index
    %c0_40 = arith.constant 0 : index
    %c0_41 = arith.constant 0 : index
    %66 = vector.load %arg5[%c3, %c0_40, %c0_41] : memref<4x16x4xbf16, #tpu.memory_space<vmem>>, vector<1x16x4xbf16>
    %67 = vector.shape_cast %66 : vector<1x16x4xbf16> to vector<16x4xbf16>
    %cst_42 = arith.constant dense<0.000000e+00> : vector<256x4xf32>
    %68 = tpu.matmul %65, %67, %cst_42 {dimension_numbers = #tpu.dot_dimension_numbers<[1], [0], [0], [1], [0, 0, 1, 1], [], []>} : vector<256x16xbf16>, vector<16x4xbf16>, vector<256x4xf32> -> vector<256x4xf32>
    %69 = vector.broadcast %21 : vector<1x4xf32> to vector<256x4xf32>
    %70 = arith.addf %68, %69 : vector<256x4xf32>
    %c0_43 = arith.constant 0 : index
    %c1_44 = arith.constant 1 : index
    %c1_45 = arith.constant 1 : index
    %c0_46 = arith.constant 0 : index
    %c0_47 = arith.constant 0 : index
    %71 = vector.load %arg7[%c0_43, %c1_44, %c1_45, %c0_46, %c0_47] : memref<1x2x2x256x4xf32, #tpu.memory_space<vmem>>, vector<1x1x1x256x4xf32>
    %72 = vector.shape_cast %71 : vector<1x1x1x256x4xf32> to vector<256x4xf32>
    %73 = vector.shape_cast %70 : vector<256x4xf32> to vector<1x1x1x256x4xf32>
    tpu.vector_store %arg7[%c0_43, %c1_44, %c1_45, %c0_46, %c0_47], %73 {strides = array<i32>} : memref<1x2x2x256x4xf32, #tpu.memory_space<vmem>>, vector<1x1x1x256x4xf32>,
    return
  }
  func.func @transform_0(%arg0: i32, %arg1: i32) -> (i32, i32, i32, i32) {
    %c0_i32 = arith.constant 0 : i32
    %c0_i32_0 = arith.constant 0 : i32
    %c0_i32_1 = arith.constant 0 : i32
    return %arg0, %arg1, %c0_i32, %c0_i32_0 : i32, i32, i32, i32
  }
  func.func @transform_1(%arg0: i32, %arg1: i32) -> (i32, i32, i32, i32) {
    %c16_i32 = arith.constant 16 : i32
    %0 = arith.muli %arg1, %c16_i32 : i32
    %c1_i32 = arith.constant 1 : i32
    %1 = arith.subi %0, %c1_i32 : i32
    %c0_i32 = arith.constant 0 : i32
    %2 = arith.maxsi %1, %c0_i32 : i32
    %c0_i32_0 = arith.constant 0 : i32
    %c0_i32_1 = arith.constant 0 : i32
    %c0_i32_2 = arith.constant 0 : i32
    return %arg0, %2, %c0_i32_0, %c0_i32_1 : i32, i32, i32, i32
  }
  func.func @transform_2(%arg0: i32, %arg1: i32) -> (i32, i32, i32, i32) {
    %c1_i32 = arith.constant 1 : i32
    %0 = arith.addi %arg1, %c1_i32 : i32
    %c16_i32 = arith.constant 16 : i32
    %1 = arith.muli %0, %c16_i32 : i32
    %c15_i32 = arith.constant 15 : i32
    %2 = arith.minsi %1, %c15_i32 : i32
    %c0_i32 = arith.constant 0 : i32
    %c0_i32_0 = arith.constant 0 : i32
    %c0_i32_1 = arith.constant 0 : i32
    return %arg0, %2, %c0_i32, %c0_i32_0 : i32, i32, i32, i32
  }
  func.func @transform_3(%arg0: i32, %arg1: i32) -> (i32, i32, i32) {
    %c0_i32 = arith.constant 0 : i32
    %c0_i32_0 = arith.constant 0 : i32
    %c0_i32_1 = arith.constant 0 : i32
    %c0_i32_2 = arith.constant 0 : i32
    return %c0_i32, %c0_i32_0, %c0_i32_1 : i32, i32, i32
  }
  func.func @transform_4(%arg0: i32, %arg1: i32) -> (i32, i32) {
    %c0_i32 = arith.constant 0 : i32
    %c0_i32_0 = arith.constant 0 : i32
    %c0_i32_1 = arith.constant 0 : i32
    return %c0_i32, %c0_i32_0 : i32, i32
  }
  func.func @transform_5(%arg0: i32, %arg1: i32) -> (i32, i32, i32, i32, i32) {
    %c0_i32 = arith.constant 0 : i32
    %c0_i32_0 = arith.constant 0 : i32
    %c0_i32_1 = arith.constant 0 : i32
    %c0_i32_2 = arith.constant 0 : i32
    return %arg0, %c0_i32, %c0_i32_0, %arg1, %c0_i32_1 : i32, i32, i32, i32, i32
  }
}

</mosaic_0001>

<bundles_post_ra>
// kernel: upsample_forward.1
= control target key start
LH: loop header
LB: loop body
LE: loop exit
PB: predicated region body
PF: predicated region fallthrough
CT: control target
= control target key end

     0   :  { %s2799_s18 = smov 0   ;;  %s2801_s19 = smov 0   ;;  %s4109_s0 = inlined_call_operand.vmem [shape: bf16[2,16,18,4], index: 0, kind: input, shape index: {}, may-alias: {0,1,2}]   ;;  %s4110_s1 = inlined_call_operand.vmem [shape: bf16[2,16,18,4], index: 1, kind: input, shape index: {}, may-alias: {0,1,2}]   ;;  %s4111_s2 = inlined_call_operand.vmem [shape: bf16[2,16,18,4], index: 2, kind: input, shape index: {}, may-alias: {0,1,2}]   ;;  %s4112_s3 = inlined_call_operand.vmem [shape: bf16[4,16,4], index: 3, kind: input, shape index: {}]   ;;  %s4113_s4 = inlined_call_operand.vmem [shape: f32[1,4], index: 4, kind: input, shape index: {}]   ;;  %s4114_s5 = inlined_call_operand.vmem [shape: f32[2,2,2,256,4], index: 5, kind: output, shape index: {}]  }
   0x1   :  { %s2803_s20 = smov 0  }
   0x2 LB: > { %s27_s1 = sadd.s32 1, %s2759_s19  ;;  %p2416_p0 = scmp.ge.s32.totalorder %s2763_s20, 1  ;;  %s2763_s20 = sphi %s2803_s20, %s15_s20   ;;  %s2759_s19 = sphi %s2801_s19, %s4120_s19   ;;  %s2755_s18 = sphi %s2799_s18, %s4119_s18  }
   0x3   : > { %p29_p1 = scmp.ge.s32.totalorder %s27_s1, 2  ;;  %p273_p2 = scmp.lt.s32.totalorder %s2763_s20, 3 }
   0x5   : > { %s4122_s1 = smov (%p29_p1, %s27_s1), 0  ;;  %p274_p3 = pnand %p2416_p0, %p273_p2 }
   0x6   : > { %p337_p4 = scmp.lt.s32.totalorder (!%p274_p3), %s2755_s18, 1  ;;  %s2766_s24 = smov (!%p274_p3), 8  }
   0x7   : > { %277 = sbr.rel (%p274_p3) target bundleno = 549 (0x225), region = 40  ;;  %s2767_s25 = smov (!%p274_p3), 4  }
   0x8   : > { %s2768_s26 = smov (!%p274_p3), 12  }
   0xc   : > { %vm460_vm0 = vsmask.f32 3328  ;;  %vm461_vm1 = vsmask.f32 7440  ;;  %vm949_vm2 = vcmask 1042432   ;;  %vm950_vm3 = vcmask 1046532  }
   0xd   : > { %s4124_s18 = smov (!%p337_p4, %s2755_s18), 1  ;;  %v2765_v0 = vmov 0   ;;  %vm2821_vm4 = vmor %vm949_vm2, %vm950_vm3  ;;  %vm1277_vm6 = vcmask 31744   ;;  %vm1326_vm7 = vcmask 64512   ;;  %vm1359_vm8 = vcmask 97280  }
   0xe   : > { %v466_v1 = vrot.slane %v2765_v0, 4  ;;  %v469_v2 = vrot.slane %v2765_v0, 5  ;;  %v2422_v4 = vrot.slane %v2765_v0, 9  ;;  %s2711_s2 = smul.u32 192, %s4124_s18  ;;  %vm2829_vm5 = vmor %vm460_vm0, %vm461_vm1  ;;  %vm1403_vm9 = vcmask 130048   ;;  %s2690_s10 = sshll.u32 %s4124_s18, 10 }
   0xf   : > { %s3612_s15 = scalar_lea.vmem %s4114_s5, %s2690_s10 }
  0x10   : > { %v470_v5 = vor.u32 %v469_v2, %v466_v1  ;;  %v955_v6 = vsel %vm2821_vm4, %v2422_v4, %v469_v2  ;;  %v956_v7 = vrot.slane %v469_v2, 4  ;;  %s2836_s23 = scalar_lea.vmem %s4109_s0, %s2711_s2 }
  0x11   : > { %v1557_v9 = vunpack.c.l.b16 %v955_v6  ;;  %v2841_v12 = vld [vmem:[%s2836_s23 + $0xc] sm:$0xff]  ;;  %v412_v14 = vld [vmem:[%s2836_s23] sm:$0xf]  ;;  %v413_v15 = vld [vmem:[%s2836_s23 + $0x4] sm:$0xf] }
  0x12   : > { %v471_v10 = vrot.slane %v470_v5, 4  ;;  %v958_v11 = vsel %vm2821_vm4, %v956_v7, %v469_v2  ;;  %v414_v17 = vld [vmem:[%s2836_s23 + $0x8] sm:$0x1]  ;;  %v501_v18 = vshrl.u32 %v413_v15, 16  ;;  %v2423_v19 = vrot.slane %v412_v14, 9  ;;  %v2849_v21 = vld [vmem:[%s2836_s23] sm:$0xff]  ;;  %1212 = vrot.lane.b32.xlu1 %v2841_v12, %s2766_s24 }
  0x13   : > { %v1558_v13 = vunpack.c.l.b16 %v958_v11  ;;  %v961_v20 = vrot.slane %v413_v15, 5  ;;  %v964_v24 = vrot.slane %v414_v17, 5  ;;  %v415_v25 = vld [vmem:[%s2836_s23 + $0xc] sm:$0xf]  ;;  %v507_v26 = vshll.u32 %v414_v17, 16  ;;  %1210 = vrot.lane.b32.xlu2 %v2849_v21, %s2766_s24 }
  0x14   : > { %v476_v16 = vsel %vm2829_vm5, %v471_v10, %v469_v2  ;;  %v488_v29 = vshrl.u32 %v412_v14, 16  ;;  %v416_v30 = vld [vmem:[%s2836_s23 + $0x10] sm:$0xf]  ;;  %v503_v32 = vrot.slane %v501_v18, 4  ;;  %v491_v34 = vshll.u32 %v412_v14, 16 }
  0x15   : > { %v1127_v22 = vunpack.c.l.b16 %v476_v16  ;;  %v2853_v23 = vpack.c.b16 %v1558_v13, %v1557_v9  ;;  %v962_v27 = vsel %vm2821_vm4, %v2423_v19, %v961_v20  ;;  %v963_v28 = vrot.slane %v961_v20, 4  ;;  %v417_v35 = vld [vmem:[%s2836_s23 + $0x14] sm:$0x1]  ;;  %v2877_v5 = vld [vmem:[%s2836_s23 + $0x18] sm:$0xf] }
  0x16   : > { %v1559_v33 = vunpack.c.l.b16 %v962_v27  ;;  %v490_v37 = vrot.slane %v488_v29, 4  ;;  %v512_v38 = vshrl.u32 %v415_v25, 16  ;;  %v515_v39 = vshll.u32 %v415_v25, 16  ;;  %v419_v10 = vld [vmem:[%s2836_s23 + $0x1c] sm:$0xf] }
  0x17   : > { %v2861_v31 = vpack.c.b16 %v1127_v22, %v1127_v22  ;;  %v965_v36 = vsel %vm2821_vm4, %v963_v28, %v964_v24  ;;  %v493_v41 = vrot.slane %v491_v34, 5  ;;  %v521_v42 = vshll.u32 %v416_v30, 16  ;;  %v420_v34 = vld [vmem:[%s2836_s23 + $0x20] sm:$0x1] }
  0x18   : > { %v1560_v40 = vunpack.c.l.b16 %v965_v36  ;;  %v525_v43 = vshrl.u32 %v416_v30, 16  ;;  %v514_v44 = vrot.slane %v512_v38, 4  ;;  %v517_v45 = vrot.slane %v515_v39, 5  ;;  %v2907_v38 = vld [vmem:[%s2836_s23 + $0x24] sm:$0xf] }
  0x19   : > { %1175 = vrot.lane.b32.xlu0 %v2861_v31, %s2767_s25  ;;  %v531_v46 = vshll.u32 %v417_v35, 16  ;;  %v497_v47 = vshll.u32 %v413_v15, 16  ;;  %v523_v49 = vrot.slane %v521_v42, 5  ;;  %v494_v51 = vor.u32 %v493_v41, %v490_v37  ;;  %v2910_v39 = vld [vmem:[%s2836_s23 + $0x28] sm:$0xf] }
  0x1a   : > { %v2868_v48 = vpack.c.b16 %v1560_v40, %v1559_v33  ;;  %v527_v50 = vrot.slane %v525_v43, 4  ;;  %v518_v52 = vor.u32 %v517_v45, %v514_v44  ;;  %v2424_v55 = vrot.slane %v415_v25, 9  ;;  %1605 = vrot.lane.b32.xlu1 %v2853_v23, %s2767_s25 }
  0x1b   : > { %v533_v53 = vrot.slane %v531_v46, 5  ;;  %v499_v54 = vrot.slane %v497_v47, 5  ;;  %v495_v57 = vrot.slane %v494_v51, 4  ;;  %v968_v58 = vrot.slane %v416_v30, 5 }
  0x1c   : > { %v528_v56 = vor.u32 %v527_v50, %v523_v49  ;;  %v971_v59 = vrot.slane %v417_v35, 5  ;;  %v509_v60 = vrot.slane %v507_v26, 5  ;;  %v519_v61 = vrot.slane %v518_v52, 4 }
  0x1d   : > { %v504_v62 = vor.u32 %v503_v32, %v499_v54  ;;  %v500_v1 = vsel %vm2829_vm5, %v495_v57, %v499_v54  ;;  %v969_v2 = vsel %vm2821_vm4, %v2424_v55, %v968_v58  ;;  %v970_v4 = vrot.slane %v968_v58, 4 }
  0x1e   : > { %v529_v63 = vrot.slane %v528_v56, 4  ;;  %v524_v6 = vsel %vm2829_vm5, %v519_v61, %v523_v49  ;;  %v1561_v9 = vunpack.c.l.b16 %v969_v2  ;;  %v1129_v14 = vunpack.c.l.b16 %v500_v1 }
  0x1f   : > { %v505_v7 = vrot.slane %v504_v62, 4  ;;  %v1131_v13 = vunpack.c.l.b16 %v524_v6  ;;  %v972_v15 = vsel %vm2821_vm4, %v970_v4, %v971_v59  ;;  %v536_v19 = vshrl.u32 %v2877_v5, 16 }
  0x20   : > { %v534_v11 = vsel %vm2829_vm5, %v529_v63, %v533_v53  ;;  %v1562_v18 = vunpack.c.l.b16 %v972_v15  ;;  %v539_v22 = vshll.u32 %v2877_v5, 16  ;;  %v545_v24 = vshll.u32 %v419_v10, 16 }
  0x21   : > { %1607 = vrot.lane.b32.xlu0 %v2868_v48, %s2767_s25  ;;  %v1132_v16 = vunpack.c.l.b16 %v534_v11  ;;  %v510_v17 = vsel %vm2829_vm5, %v505_v7, %v509_v60  ;;  %v549_v25 = vshrl.u32 %v419_v10, 16  ;;  %v538_v29 = vrot.slane %v536_v19, 4  ;;  %v423_v60 = vld [vmem:[%s2836_s23 + $0x2c] sm:$0x1]  ;;  %v2943_v11 = vld [vmem:[%s2836_s23 + $0x30] sm:$0xf] }
  0x22   : > { %v1130_v20 = vunpack.c.l.b16 %v510_v17  ;;  %v1591_v27 = vpack.c.b16 %v1562_v18, %v1561_v9  ;;  %v541_v30 = vrot.slane %v539_v22, 5  ;;  %v547_v32 = vrot.slane %v545_v24, 5 }
  0x23   : > { %v2892_v26 = vpack.c.b16 %v1132_v16, %v1131_v13  ;;  %v551_v33 = vrot.slane %v549_v25, 4  ;;  %v555_v37 = vshll.u32 %v420_v34, 16  ;;  %v560_v43 = vshrl.u32 %v2907_v38, 16  ;;  %v2946_v13 = vld [vmem:[%s2836_s23 + $0x34] sm:$0xf] }
  0x24   : > { %v2894_v28 = vpack.c.b16 %v1130_v20, %v1129_v14  ;;  %1674 = vrot.lane.b32.xlu2 %v1591_v27, %s2768_s26  ;;  %v542_v35 = vor.u32 %v541_v30, %v538_v29  ;;  %v563_v44 = vshll.u32 %v2907_v38, 16  ;;  %v569_v45 = vshll.u32 %v2910_v39, 16 }
  0x25   : > { %1639 = vrot.lane.b32.xlu1 %v2892_v26, %s2766_s24  ;;  %v552_v36 = vor.u32 %v551_v33, %v547_v32  ;;  %v557_v42 = vrot.slane %v555_v37, 5  ;;  %v573_v46 = vshrl.u32 %v2910_v39, 16  ;;  %v975_v47 = vrot.slane %v419_v10, 5 }
  0x26   : > { %v543_v40 = vrot.slane %v542_v35, 4  ;;  %v2425_v51 = vrot.slane %v2877_v5, 9  ;;  %v562_v52 = vrot.slane %v560_v43, 4  ;;  %v565_v53 = vrot.slane %v563_v44, 5  ;;  %v2936_v5 = vld [vmem:[%s2836_s23 + $0x18] sm:$0xff] }
  0x27   : > { %v553_v41 = vrot.slane %v552_v36, 4  ;;  %v571_v54 = vrot.slane %v569_v45, 5  ;;  %v575_v55 = vrot.slane %v573_v46, 4  ;;  %v977_v58 = vrot.slane %v975_v47, 4  ;;  %v426_v36 = vld [vmem:[%s2836_s23 + $0x38] sm:$0x1] }
  0x28   : > { %v548_v49 = vsel %vm2829_vm5, %v543_v40, %v547_v32  ;;  %v978_v59 = vrot.slane %v420_v34, 5  ;;  %v976_v61 = vsel %vm2821_vm4, %v2425_v51, %v975_v47  ;;  %v566_v62 = vor.u32 %v565_v53, %v562_v52  ;;  %v2982_v51 = vld [vmem:[%s2836_s23 + $0x40] sm:$0xf] }
  0x29   : > { %1177 = vrot.lane.b32.xlu0 %v2894_v28, %s2767_s25  ;;  %v558_v50 = vsel %vm2829_vm5, %v553_v41, %v557_v42  ;;  %v1133_v56 = vunpack.c.l.b16 %v548_v49  ;;  %v576_v63 = vor.u32 %v575_v55, %v571_v54  ;;  %v579_v1 = vshll.u32 %v423_v60, 16  ;;  %v2970_v42 = vld [vmem:[%s2836_s23 + $0x24] sm:$0xff] }
  0x2a   : > { %v1134_v57 = vunpack.c.l.b16 %v558_v50  ;;  %v979_v4 = vsel %vm2821_vm4, %v977_v58, %v978_v59  ;;  %v567_v7 = vrot.slane %v566_v62, 4  ;;  %v584_v17 = vshrl.u32 %v2943_v11, 16  ;;  %v2979_v50 = vld [vmem:[%s2836_s23 + $0x3c] sm:$0xf] }
  0x2b   : > { %v1564_v6 = vunpack.c.l.b16 %v979_v4  ;;  %v577_v9 = vrot.slane %v576_v63, 4  ;;  %v581_v10 = vrot.slane %v579_v1, 5  ;;  %v587_v18 = vshll.u32 %v2943_v11, 16 }
  0x2c   : > { %1247 = vrot.lane.b32.xlu2 %v2892_v26, %s2768_s26  ;;  %v2931_v2 = vpack.c.b16 %v1134_v57, %v1133_v56  ;;  %v572_v15 = vsel %vm2829_vm5, %v567_v7, %v571_v54  ;;  %v593_v19 = vshll.u32 %v2946_v13, 16  ;;  %v597_v20 = vshrl.u32 %v2946_v13, 16 }
  0x2d   : > { %1245 = vrot.lane.b32.xlu1 %v2894_v28, %s2768_s26  ;;  %v582_v16 = vsel %vm2829_vm5, %v577_v9, %v581_v10  ;;  %v982_v22 = vrot.slane %v2910_v39, 5  ;;  %v1135_v24 = vunpack.c.l.b16 %v572_v15  ;;  %v586_v29 = vrot.slane %v584_v17, 4  ;;  %v429_v9 = vld [vmem:[%s2836_s23 + $0x44] sm:$0x1] }
  0x2e   : > { %v1136_v25 = vunpack.c.l.b16 %v582_v16  ;;  %v589_v30 = vrot.slane %v587_v18, 5  ;;  %v595_v32 = vrot.slane %v593_v19, 5  ;;  %v599_v33 = vrot.slane %v597_v20, 4  ;;  %v3015_v20 = vld [vmem:[%s2836_s23 + $0x48] sm:$0xf] }
  0x2f   : > { %v984_v34 = vrot.slane %v982_v22, 4  ;;  %v985_v35 = vrot.slane %v423_v60, 5  ;;  %v603_v41 = vshll.u32 %v426_v36, 16  ;;  %v989_v55 = vrot.slane %v2946_v13, 5 }
  0x30   : > { %v590_v39 = vor.u32 %v589_v30, %v586_v29  ;;  %v600_v40 = vor.u32 %v599_v33, %v595_v32  ;;  %v608_v56 = vshrl.u32 %v2979_v50, 16  ;;  %v611_v57 = vshll.u32 %v2979_v50, 16 }
  0x31   : > { %1637 = vrot.lane.b32.xlu0 %v2894_v28, %s2766_s24  ;;  %v986_v43 = vsel %vm2821_vm4, %v984_v34, %v985_v35  ;;  %v605_v49 = vrot.slane %v603_v41, 5  ;;  %v617_v58 = vshll.u32 %v2982_v51, 16  ;;  %v621_v59 = vshrl.u32 %v2982_v51, 16 }
  0x32   : > { %v1566_v45 = vunpack.c.l.b16 %v986_v43  ;;  %v591_v46 = vrot.slane %v590_v39, 4  ;;  %v601_v47 = vrot.slane %v600_v40, 4  ;;  %v2427_v62 = vrot.slane %v2943_v11, 9  ;;  %v3006_v11 = vld [vmem:[%s2836_s23 + $0x30] sm:$0xff] }
  0x33   : > { %v991_v63 = vrot.slane %v989_v55, 4  ;;  %v992_v1 = vrot.slane %v426_v36, 5  ;;  %v610_v4 = vrot.slane %v608_v56, 4  ;;  %v623_v7 = vrot.slane %v621_v59, 4 }
  0x34   : > { %1672 = vrot.lane.b32.xlu2 %v2868_v48, %s2768_s26  ;;  %v1563_v48 = vunpack.c.l.b16 %v976_v61  ;;  %v596_v53 = vsel %vm2829_vm5, %v591_v46, %v595_v32  ;;  %v606_v54 = vsel %vm2829_vm5, %v601_v47, %v605_v49  ;;  %v990_v13 = vsel %vm2821_vm4, %v2427_v62, %v989_v55 }
  0x35   : > { %1609 = vrot.lane.b32.xlu1 %v1591_v27, %s2767_s25  ;;  %v2426_v27 = vrot.slane %v2907_v38, 9  ;;  %v2967_v38 = vpack.c.b16 %v1136_v25, %v1135_v24  ;;  %v1137_v60 = vunpack.c.l.b16 %v596_v53  ;;  %v1138_v61 = vunpack.c.l.b16 %v606_v54 }
  0x36   : > { %v1592_v14 = vpack.c.b16 %v1564_v6, %v1563_v48  ;;  %v613_v48 = vrot.slane %v611_v57, 5  ;;  %v619_v6 = vrot.slane %v617_v58, 5  ;;  %v627_v17 = vshll.u32 %v429_v9, 16  ;;  %v3044_v57 = vld [vmem:[%s2836_s23 + $0x3c] sm:$0xff] }
  0x37   : > { %v983_v37 = vsel %vm2821_vm4, %v2426_v27, %v982_v22  ;;  %v3001_v10 = vpack.c.b16 %v1138_v61, %v1137_v60  ;;  %v1567_v18 = vunpack.c.l.b16 %v990_v13  ;;  %v3018_v22 = vld [vmem:[%s2836_s23 + $0x4c] sm:$0xf]  ;;  %v632_v29 = vshrl.u32 %v3015_v20, 16 }
  0x38   : > { %v1565_v44 = vunpack.c.l.b16 %v983_v37  ;;  %v614_v15 = vor.u32 %v613_v48, %v610_v4  ;;  %v624_v16 = vor.u32 %v623_v7, %v619_v6  ;;  %v629_v27 = vrot.slane %v627_v17, 5 }
  0x39   : > { %1179 = vrot.lane.b32.xlu0 %v2892_v26, %s2767_s25  ;;  %v635_v30 = vshll.u32 %v3015_v20, 16  ;;  %v641_v32 = vshll.u32 %v3018_v22, 16  ;;  %v645_v33 = vshrl.u32 %v3018_v22, 16  ;;  %v996_v35 = vrot.slane %v2982_v51, 5  ;;  %v432_v51 = vld [vmem:[%s2836_s23 + $0x50] sm:$0x1] }
  0x3a   : > { %v1593_v52 = vpack.c.b16 %v1566_v45, %v1565_v44  ;;  %v615_v24 = vrot.slane %v614_v15, 4  ;;  %v625_v25 = vrot.slane %v624_v16, 4  ;;  %v2428_v39 = vrot.slane %v2979_v50, 9 }
  0x3b   : > { %v634_v40 = vrot.slane %v632_v29, 4  ;;  %v637_v41 = vrot.slane %v635_v30, 5  ;;  %v643_v43 = vrot.slane %v641_v32, 5  ;;  %v647_v44 = vrot.slane %v645_v33, 4  ;;  %v2710_v30 = vld [vmem:[%s4112_s3 + $0x18] sm:$0xff] }
  0x3c   : > { %1214 = vrot.lane.b32.xlu2 %v2936_v5, %s2766_s24  ;;  %v620_v36 = vsel %vm2829_vm5, %v615_v24, %v619_v6  ;;  %v630_v37 = vsel %vm2829_vm5, %v625_v25, %v629_v27  ;;  %v998_v47 = vrot.slane %v996_v35, 4  ;;  %v999_v49 = vrot.slane %v429_v9, 5  ;;  %v435_v33 = vld [vmem:[%s2836_s23 + $0x5c] sm:$0x1]  ;;  %2165 = vmatpush.bf16.msra.mxu3 %v2710_v30 }
  0x3d   : > { %1249 = vrot.lane.b32.xlu1 %v2931_v2, %s2768_s26  ;;  %v1139_v45 = vunpack.c.l.b16 %v620_v36  ;;  %v1140_v46 = vunpack.c.l.b16 %v630_v37  ;;  %v997_v50 = vsel %vm2821_vm4, %v2428_v39, %v996_v35  ;;  %v648_v53 = vor.u32 %v647_v44, %v643_v43  ;;  %v3083_v39 = vld [vmem:[%s2836_s23 + $0x48] sm:$0xff]  ;;  %v2707_v44 = vld [vmem:[%s4112_s3] sm:$0xff] }
  0x3e   : > { %v651_v54 = vshll.u32 %v432_v51, 16  ;;  %v1000_v56 = vsel %vm2821_vm4, %v998_v47, %v999_v49  ;;  %v1569_v58 = vunpack.c.l.b16 %v997_v50  ;;  %v1003_v15 = vrot.slane %v3018_v22, 5  ;;  %1443 = vmatpush.bf16.msra.mxu0 %v2707_v44  ;;  %v3100_v50 = vld [vmem:[%s2836_s23 + $0x60] sm:$0xf] }
  0x3f   : > { %v3039_v55 = vpack.c.b16 %v1140_v46, %v1139_v45  ;;  %v1570_v59 = vunpack.c.l.b16 %v1000_v56  ;;  %v649_v61 = vrot.slane %v648_v53, 4  ;;  %v1006_v32 = vrot.slane %v432_v51, 5  ;;  %v2708_v53 = vld [vmem:[%s4112_s3 + $0x8] sm:$0xff] }
  0x40   : > { %v653_v62 = vrot.slane %v651_v54, 5  ;;  %v1005_v22 = vrot.slane %v1003_v15, 4  ;;  %v675_v37 = vshll.u32 %v435_v33, 16  ;;  %1864 = vmatpush.bf16.msra.mxu1 %v2708_v53 }
  0x41   : > { %1641 = vrot.lane.b32.xlu0 %v2931_v2, %s2766_s24  ;;  %v1595_v4 = vpack.c.b16 %v1570_v59, %v1569_v58 }
  0x42   : > { %v654_v6 = vsel %vm2829_vm5, %v649_v61, %v653_v62  ;;  %v677_v49 = vrot.slane %v675_v37, 5  ;;  %v683_v61 = vshll.u32 %v3100_v50, 16  ;;  %v3148_v37 = vld [vmem:[%s2836_s23 + $0x70] sm:$0xf] }
  0x43   : > { %v1142_v17 = vunpack.c.l.b16 %v654_v6  ;;  %v713_v53 = vshll.u32 %v3148_v37, 16 }
  0x44   : > { %1676 = vrot.lane.b32.xlu2 %v1592_v14, %s2768_s26 }
  0x45   : > { %1611 = vrot.lane.b32.xlu1 %v1592_v14, %s2767_s25  ;;  %v993_v14 = vsel %vm2821_vm4, %v991_v63, %v992_v1  ;;  %v3051_v63 = vld [vmem:[%s2836_s23 + $0x54] sm:$0xf]  ;;  %v3054_v1 = vld [vmem:[%s2836_s23 + $0x58] sm:$0xf] }
  0x46   : > { %v1568_v19 = vunpack.c.l.b16 %v993_v14  ;;  %v656_v7 = vshrl.u32 %v3051_v63, 16  ;;  %v659_v9 = vshll.u32 %v3051_v63, 16  ;;  %v665_v13 = vshll.u32 %v3054_v1, 16 }
  0x47   : > { %v669_v14 = vshrl.u32 %v3054_v1, 16  ;;  %v1010_v59 = vrot.slane %v3054_v1, 5 }
  0x48   : > { %v1594_v34 = vpack.c.b16 %v1568_v19, %v1567_v18  ;;  %v2429_v18 = vrot.slane %v3015_v20, 9  ;;  %v658_v24 = vrot.slane %v656_v7, 4  ;;  %v661_v25 = vrot.slane %v659_v9, 5 }
  0x49   : > { %1181 = vrot.lane.b32.xlu0 %v2931_v2, %s2767_s25  ;;  %v667_v27 = vrot.slane %v665_v13, 5  ;;  %v671_v29 = vrot.slane %v669_v14, 4  ;;  %v2430_v7 = vrot.slane %v3051_v63, 9  ;;  %v1012_v9 = vrot.slane %v1010_v59, 4 }
  0x4a   : > { %v662_v35 = vor.u32 %v661_v25, %v658_v24  ;;  %v1013_v13 = vrot.slane %v435_v33, 5  ;;  %v438_v24 = vld [vmem:[%s2836_s23 + $0x68] sm:$0x1] }
  0x4b   : > { %v672_v36 = vor.u32 %v671_v29, %v667_v27  ;;  %v1011_v63 = vsel %vm2821_vm4, %v2430_v7, %v1010_v59  ;;  %v699_v33 = vshll.u32 %v438_v24, 16  ;;  %v715_v7 = vrot.slane %v713_v53, 5 }
  0x4c   : > { %1216 = vrot.lane.b32.xlu2 %v2970_v42, %s2766_s24  ;;  %v663_v46 = vrot.slane %v662_v35, 4  ;;  %v1014_v30 = vsel %vm2821_vm4, %v1012_v9, %v1013_v13  ;;  %v1573_v35 = vunpack.c.l.b16 %v1011_v63 }
  0x4d   : > { %1251 = vrot.lane.b32.xlu1 %v2967_v38, %s2768_s26  ;;  %v673_v47 = vrot.slane %v672_v36, 4  ;;  %v1574_v36 = vunpack.c.l.b16 %v1014_v30  ;;  %v701_v44 = vrot.slane %v699_v33, 5 }
  0x4e   : > { %v668_v56 = vsel %vm2829_vm5, %v663_v46, %v667_v27  ;;  %v3134_v27 = vld [vmem:[%s2836_s23 + $0x54] sm:$0xff] }
  0x4f   : > { %v678_v58 = vsel %vm2829_vm5, %v673_v47, %v677_v49 }
  0x50   : > { %v1144_v6 = vunpack.c.l.b16 %v678_v58  ;;  %v1079_v58 = vunpack.c.l.b16 %v2765_v0  ;;  %v3170_v0 = vld [vmem:[%s2836_s23 + $0x74] sm:$0x1] }
  0x51   : > { %1643 = vrot.lane.b32.xlu0 %v2967_v38, %s2766_s24  ;;  %v723_v33 = vshll.u32 %v3170_v0, 16 }
  0x54   : > { %1678 = vrot.lane.b32.xlu2 %v1593_v52, %s2768_s26 }
  0x55   : > { %1613 = vrot.lane.b32.xlu1 %v1593_v52, %s2767_s25  ;;  %v638_v52 = vor.u32 %v637_v41, %v634_v40  ;;  %v2709_v40 = vld [vmem:[%s4112_s3 + $0x10] sm:$0xff]  ;;  %v1007_v41 = vsel %vm2821_vm4, %v1005_v22, %v1006_v32 }
  0x56   : > { %2016 = vmatpush.bf16.msra.mxu2 %v2709_v40  ;;  %v1572_v45 = vunpack.c.l.b16 %v1007_v41 }
  0x57   : > { %v639_v60 = vrot.slane %v638_v52, 4  ;;  %v3103_v52 = vld [vmem:[%s2836_s23 + $0x64] sm:$0xf] }
  0x58   : > { %v689_v62 = vshll.u32 %v3103_v52, 16  ;;  %v1017_v49 = vrot.slane %v3103_v52, 5 }
  0x59   : > { %1183 = vrot.lane.b32.xlu0 %v2967_v38, %s2767_s25  ;;  %v644_v48 = vsel %vm2829_vm5, %v639_v60, %v643_v43  ;;  %v680_v60 = vshrl.u32 %v3100_v50, 16 }
  0x5a   : > { %v1141_v16 = vunpack.c.l.b16 %v644_v48  ;;  %v1143_v48 = vunpack.c.l.b16 %v668_v56  ;;  %v1597_v56 = vpack.c.b16 %v1574_v36, %v1573_v35  ;;  %v3193_v36 = vld [vmem:[%s2836_s23 + $0x60] sm:$0xff] }
  0x5b   : > { %v682_v14 = vrot.slane %v680_v60, 4 }
  0x5c   : > { %1218 = vrot.lane.b32.xlu2 %v3006_v11, %s2766_s24  ;;  %v3078_v20 = vpack.c.b16 %v1142_v17, %v1141_v16  ;;  %v691_v16 = vrot.slane %v689_v62, 5  ;;  %v3129_v25 = vpack.c.b16 %v1144_v6, %v1143_v48  ;;  %v2431_v62 = vrot.slane %v3100_v50, 9 }
  0x5d   : > { %1253 = vrot.lane.b32.xlu1 %v3001_v10, %s2768_s26  ;;  %v1020_v6 = vrot.slane %v438_v24, 5 }
  0x61   : > { %1645 = vrot.lane.b32.xlu0 %v3001_v10, %s2766_s24 }
  0x64   : > { %1680 = vrot.lane.b32.xlu2 %v1594_v34, %s2768_s26 }
  0x65   : > { %1615 = vrot.lane.b32.xlu1 %v1594_v34, %s2767_s25  ;;  %v1004_v34 = vsel %vm2821_vm4, %v2429_v18, %v1003_v15  ;;  %v685_v15 = vrot.slane %v683_v61, 5 }
  0x66   : > { %v1571_v43 = vunpack.c.l.b16 %v1004_v34  ;;  %v3141_v34 = vld [vmem:[%s2836_s23 + $0x6c] sm:$0xf] }
  0x67   : > { %v686_v22 = vor.u32 %v685_v15, %v682_v14  ;;  %v704_v46 = vshrl.u32 %v3141_v34, 16  ;;  %v707_v47 = vshll.u32 %v3141_v34, 16  ;;  %v3172_v15 = vpack.c.b16 %v1079_v58, %v1079_v58 }
  0x68   : > { %v1596_v54 = vpack.c.b16 %v1572_v45, %v1571_v43 }
  0x69   : > { %1185 = vrot.lane.b32.xlu0 %v3001_v10, %s2767_s25  ;;  %v687_v41 = vrot.slane %v686_v22, 4  ;;  %v709_v48 = vrot.slane %v707_v47, 5 }
  0x6b   : > { %v692_v60 = vsel %vm2829_vm5, %v687_v41, %v691_v16 }
  0x6c   : > { %1220 = vrot.lane.b32.xlu2 %v3044_v57, %s2766_s24  ;;  %v1145_v13 = vunpack.c.l.b16 %v692_v60 }
  0x6d   : > { %1255 = vrot.lane.b32.xlu1 %v3039_v55, %s2768_s26  ;;  %v3070_v19 = vpop.permute.xlu2 %1210 }
  0x71   : > { %1647 = vrot.lane.b32.xlu0 %v3039_v55, %s2766_s24 }
  0x74   : > { %1682 = vrot.lane.b32.xlu2 %v1595_v4, %s2768_s26 }
  0x75   : > { %1617 = vrot.lane.b32.xlu1 %v1595_v4, %s2767_s25  ;;  %v693_v4 = vshrl.u32 %v3103_v52, 16  ;;  %v1019_v52 = vrot.slane %v1017_v49, 4 }
  0x77   : > { %v695_v17 = vrot.slane %v693_v4, 4  ;;  %v706_v4 = vrot.slane %v704_v46, 4  ;;  %v1021_v22 = vsel %vm2821_vm4, %v1019_v52, %v1020_v6 }
  0x78   : > { %v1576_v46 = vunpack.c.l.b16 %v1021_v22 }
  0x79   : > { %1187 = vrot.lane.b32.xlu0 %v3039_v55, %s2767_s25  ;;  %v696_v32 = vor.u32 %v695_v17, %v691_v16  ;;  %v1018_v17 = vsel %vm2821_vm4, %v2431_v62, %v1017_v49  ;;  %v710_v63 = vor.u32 %v709_v48, %v706_v4  ;;  %v1024_v4 = vrot.slane %v3148_v37, 5 }
  0x7b   : > { %v697_v43 = vrot.slane %v696_v32, 4  ;;  %v711_v47 = vrot.slane %v710_v63, 4  ;;  %v1027_v63 = vrot.slane %v3170_v0, 5 }
  0x7c   : > { %1222 = vrot.lane.b32.xlu2 %v3083_v39, %s2766_s24 }
  0x7d   : > { %1257 = vrot.lane.b32.xlu1 %v3078_v20, %s2768_s26  ;;  %v702_v61 = vsel %vm2829_vm5, %v697_v43, %v701_v44  ;;  %v1575_v44 = vunpack.c.l.b16 %v1018_v17  ;;  %v1026_v17 = vrot.slane %v1024_v4, 4 }
  0x7e   : > { %v3097_v51 = vpop.permute.xlu2 %1674  ;;  %v1146_v14 = vunpack.c.l.b16 %v702_v61  ;;  %v716_v61 = vsel %vm2829_vm5, %v711_v47, %v715_v7 }
  0x80   : > { %v3190_v35 = vpack.c.b16 %v1146_v14, %v1145_v13  ;;  %v1147_v14 = vunpack.c.l.b16 %v716_v61  ;;  %v3272_v61 = vld [vmem:[%s2836_s23 + $0x84] sm:$0xf] }
  0x81   : > { %1649 = vrot.lane.b32.xlu0 %v3078_v20, %s2766_s24 }
  0x84   : > { %1684 = vrot.lane.b32.xlu2 %v1596_v54, %s2768_s26  ;;  %v3122_v1 = vpop.permute.xlu1 %1212 }
  0x85   : > { %1619 = vrot.lane.b32.xlu1 %v1596_v54, %s2767_s25  ;;  %v717_v54 = vshrl.u32 %v3148_v37, 16 }
  0x86   : > { %v3124_v18 = vpop.permute.xlu2 %1247 }
  0x87   : > { %v719_v9 = vrot.slane %v717_v54, 4  ;;  %v725_v54 = vrot.slane %v723_v33, 5  ;;  %v3249_v33 = vld [vmem:[%s2836_s23 + $0x80] sm:$0x1] }
  0x88   : > { %v747_v47 = vshll.u32 %v3249_v33, 16 }
  0x89   : > { %1189 = vrot.lane.b32.xlu0 %v3078_v20, %s2767_s25  ;;  %v720_v32 = vor.u32 %v719_v9, %v715_v7 }
  0x8b   : > { %v3136_v29 = vpop.permute.xlu0 %1175  ;;  %v721_v53 = vrot.slane %v720_v32, 4 }
  0x8c   : > { %1224 = vrot.lane.b32.xlu2 %v3134_v27, %s2766_s24  ;;  %v3150_v40 = vpop.permute.xlu1 %1605 }
  0x8d   : > { %1259 = vrot.lane.b32.xlu1 %v3129_v25, %s2768_s26  ;;  %v726_v62 = vsel %vm2829_vm5, %v721_v53, %v725_v54  ;;  %v1706_v9 = vsel %vm1277_vm6, %v2861_v31, %v3150_v40 }
  0x8e   : > { %v3152_v45 = vpop.permute.xlu2 %1672  ;;  %v1148_v37 = vunpack.c.l.b16 %v726_v62 }
  0x91   : > { %1651 = vrot.lane.b32.xlu0 %v3129_v25, %s2766_s24 }
  0x93   : > { %v1608_v59 = vpop.permute.xlu0 %1607 }
  0x94   : > { %1686 = vrot.lane.b32.xlu2 %v1597_v56, %s2768_s26  ;;  %v1709_v50 = vsel %vm1277_vm6, %v2894_v28, %v1608_v59  ;;  %v1598_v59 = vpack.c.b16 %v1576_v46, %v1575_v44 }
  0x95   : > { %1621 = vrot.lane.b32.xlu1 %v1597_v56, %s2767_s25 }
  0x96   : > { %v3178_v24 = vpop.permute.xlu2 %1214 }
  0x97   : > { %v1640_v16 = vpop.permute.xlu1 %1639 }
  0x98   : > { %v1755_v30 = vsel %vm1326_vm7, %v1709_v50, %v1640_v16  ;;  %v2432_v16 = vrot.slane %v3141_v34, 9  ;;  %v3255_v34 = vpack.c.b16 %v1148_v37, %v1147_v14 }
  0x99   : > { %1191 = vrot.lane.b32.xlu0 %v3129_v25, %s2767_s25  ;;  %v3188_v28 = vsel %vm1359_vm8, %v1755_v30, %v3097_v51  ;;  %v1280_v51 = vsel %vm1277_vm6, %v3172_v15, %v3136_v29  ;;  %v3218_v29 = vld [vmem:[%s2836_s23 + $0x7c] sm:$0xf] }
  0x9a   : > { %2638 = vmatmul.msk.bf16.vlgmr.msra.gmra.mxu3 %vm1403_vm9, %v3188_v28  ;;  %v737_v52 = vshll.u32 %v3218_v29, 16  ;;  %v741_v6 = vshrl.u32 %v3218_v29, 16  ;;  %v1025_v0 = vsel %vm2821_vm4, %v2432_v16, %v1024_v4  ;;  %v1031_v37 = vrot.slane %v3218_v29, 5 }
  0x9b   : > { %v1178_v41 = vpop.permute.xlu0 %1177  ;;  %v1577_v54 = vunpack.c.l.b16 %v1025_v0 }
  0x9c   : > { %v1283_v43 = vsel %vm1277_vm6, %v2849_v21, %v1178_v41  ;;  %1226 = vrot.lane.b32.xlu2 %v3193_v36, %s2766_s24  ;;  %v3215_v21 = vld [vmem:[%s2836_s23 + $0x78] sm:$0xf]  ;;  %v739_v22 = vrot.slane %v737_v52, 5  ;;  %v743_v32 = vrot.slane %v741_v6, 4 }
  0x9d   : > { %v1330_v49 = vsel %vm1326_vm7, %v1283_v43, %v3122_v1  ;;  %1261 = vrot.lane.b32.xlu1 %v3190_v35, %s2768_s26  ;;  %v1328_v1 = vsel %vm1326_vm7, %v1280_v51, %v3070_v19  ;;  %v728_v19 = vshrl.u32 %v3215_v21, 16  ;;  %v731_v48 = vshll.u32 %v3215_v21, 16 }
  0x9e   : > { %v3208_v56 = vsel %vm1359_vm8, %v1330_v49, %v3124_v18  ;;  %v3222_v60 = vpop.permute.xlu2 %1676  ;;  %v1028_v43 = vsel %vm2821_vm4, %v1026_v17, %v1027_v63  ;;  %v744_v46 = vor.u32 %v743_v32, %v739_v22  ;;  %v3263_v49 = vld [vmem:[%s2836_s23 + $0x6c] sm:$0xff]  ;;  %v1034_v32 = vrot.slane %v3249_v33, 5 }
  0x9f   : > { %2584 = vmatmul.msk.bf16.vlgmr.msra.gmra.mxu2 %vm1403_vm9, %v3208_v56  ;;  %v1246_v58 = vpop.permute.xlu1 %1245  ;;  %v730_v30 = vrot.slane %v728_v19, 4  ;;  %v733_v40 = vrot.slane %v731_v48, 5 }
  0xa0   : > { %v1361_v18 = vsel %vm1359_vm8, %v1328_v1, %v1246_v58  ;;  %v1578_v1 = vunpack.c.l.b16 %v1028_v43 }
  0xa1   : > { %1653 = vrot.lane.b32.xlu0 %v3190_v35, %s2766_s24  ;;  %2508 = vmatmul.msk.bf16.vlgmr.msra.gmra.mxu0 %vm1403_vm9, %v1361_v18  ;;  %v734_v44 = vor.u32 %v733_v40, %v730_v30  ;;  %v749_v18 = vrot.slane %v747_v47, 5  ;;  %v2433_v30 = vrot.slane %v3215_v21, 9 }
  0xa2   : > { %v1599_v52 = vpack.c.b16 %v1578_v1, %v1577_v54  ;;  %v3320_v54 = vld [vmem:[%s2836_s23 + $0x78] sm:$0xff] }
  0xa3   : > { %v1638_v7 = vpop.permute.xlu0 %1637  ;;  %v735_v58 = vrot.slane %v734_v44, 4  ;;  %v1032_v47 = vsel %vm2821_vm4, %v2433_v30, %v1031_v37 }
  0xa4   : > { %v1753_v13 = vsel %vm1326_vm7, %v1706_v9, %v1638_v7  ;;  %1688 = vrot.lane.b32.xlu2 %v1598_v59, %s2768_s26  ;;  %v752_v9 = vshrl.u32 %v3272_v61, 16  ;;  %v755_v7 = vshll.u32 %v3272_v61, 16 }
  0xa5   : > { %v1785_v50 = vsel %vm1359_vm8, %v1753_v13, %v3152_v45  ;;  %1623 = vrot.lane.b32.xlu1 %v1598_v59, %s2767_s25  ;;  %v745_v59 = vrot.slane %v744_v46, 4  ;;  %v740_v6 = vsel %vm2829_vm5, %v735_v58, %v739_v22  ;;  %v1033_v22 = vrot.slane %v1031_v37, 4 }
  0xa6   : > { %2530 = vmatmul.msk.bf16.vlgmr.msra.gmra.mxu1 %vm1403_vm9, %v1785_v50  ;;  %v3251_v45 = vpop.permute.xlu2 %1216  ;;  %v1149_v63 = vunpack.c.l.b16 %v740_v6  ;;  %v754_v29 = vrot.slane %v752_v9, 4  ;;  %v757_v40 = vrot.slane %v755_v7, 5  ;;  %v1579_v58 = vunpack.c.l.b16 %v1032_v47  ;;  %v3333_v9 = vld [vmem:[%s2836_s23 + $0x90] sm:$0xf]  ;;  %v3339_v7 = vld [vmem:[%s2836_s23 + $0x94] sm:$0xf] }
  0xa7   : > { %v1610_v41 = vpop.permute.xlu1 %1609  ;;  %v1035_v33 = vsel %vm2821_vm4, %v1033_v22, %v1034_v32  ;;  %v789_v30 = vshrl.u32 %v3339_v7, 16 }
  0xa8   : > { %v1712_v13 = vsel %vm1277_vm6, %v2892_v26, %v1610_v41  ;;  %v758_v44 = vor.u32 %v757_v40, %v754_v29  ;;  %v2434_v40 = vrot.slane %v3272_v61, 9 }
  0xa9   : > { %1193 = vrot.lane.b32.xlu0 %v3190_v35, %s2767_s25 }
  0xab   : > { %v1180_v51 = vpop.permute.xlu0 %1179 }
  0xac   : > { %v1286_v53 = vsel %vm1277_vm6, %v2841_v12, %v1180_v51  ;;  %1228 = vrot.lane.b32.xlu2 %v3263_v49, %s2766_s24  ;;  %v3279_v12 = vld [vmem:[%s2836_s23 + $0x88] sm:$0xf] }
  0xad   : > { %1263 = vrot.lane.b32.xlu1 %v3255_v34, %s2768_s26  ;;  %v1332_v62 = vsel %vm1326_vm7, %v1286_v53, %v3178_v24  ;;  %v750_v24 = vsel %vm2829_vm5, %v745_v59, %v749_v18  ;;  %v765_v50 = vshrl.u32 %v3279_v12, 16  ;;  %v1580_v59 = vunpack.c.l.b16 %v1035_v33 }
  0xae   : > { %v3276_v19 = vpop.permute.xlu2 %1678  ;;  %v1150_v26 = vunpack.c.l.b16 %v750_v24  ;;  %v759_v18 = vrot.slane %v758_v44, 4  ;;  %v791_v44 = vrot.slane %v789_v30, 4 }
  0xaf   : > { %v1250_v4 = vpop.permute.xlu1 %1249  ;;  %v767_v41 = vrot.slane %v765_v50, 4  ;;  %v1038_v50 = vrot.slane %v3279_v12, 5 }
  0xb0   : > { %v1365_v48 = vsel %vm1359_vm8, %v1332_v62, %v1250_v4  ;;  %v3313_v21 = vpack.c.b16 %v1150_v26, %v1149_v63  ;;  %v785_v26 = vshll.u32 %v3339_v7, 16 }
  0xb1   : > { %1655 = vrot.lane.b32.xlu0 %v3255_v34, %s2766_s24  ;;  %2509 = vmatmul.msk.bf16.gmra.mxu0 %vm1403_vm9, %v3208_v56  ;;  %v761_v56 = vshll.u32 %v3279_v12, 16  ;;  %v1040_v22 = vrot.slane %v1038_v50, 4  ;;  %v1039_v61 = vsel %vm2821_vm4, %v2434_v40, %v1038_v50  ;;  %v1045_v50 = vrot.slane %v3339_v7, 5 }
  0xb2   : > { %2585 = vmatmul.msk.bf16.gmra.mxu2 %vm1403_vm9, %v1365_v48 }
  0xb3   : > { %v1642_v14 = vpop.permute.xlu0 %1641 }
  0xb4   : > { %v1757_v16 = vsel %vm1326_vm7, %v1712_v13, %v1642_v14  ;;  %1690 = vrot.lane.b32.xlu2 %v1599_v52, %s2768_s26  ;;  %v1600_v13 = vpack.c.b16 %v1580_v59, %v1579_v58 }
  0xb5   : > { %v1789_v17 = vsel %vm1359_vm8, %v1757_v16, %v3222_v60  ;;  %1625 = vrot.lane.b32.xlu1 %v1599_v52, %s2767_s25  ;;  %v763_v60 = vrot.slane %v761_v56, 5  ;;  %v776_v16 = vshrl.u32 %v3333_v9, 16 }
  0xb6   : > { %2531 = vmatmul.msk.bf16.gmra.mxu1 %vm1403_vm9, %v3188_v28  ;;  %2639 = vmatmul.msk.bf16.gmra.mxu3 %vm1403_vm9, %v1789_v17  ;;  %v3308_v43 = vpop.permute.xlu2 %1218  ;;  %v447_v28 = vld [vmem:[%s2836_s23 + $0x8c] sm:$0x1] }
  0xb7   : > { %v1612_v0 = vpop.permute.xlu1 %1611  ;;  %v768_v51 = vor.u32 %v767_v41, %v763_v60  ;;  %v771_v53 = vshll.u32 %v447_v28, 16  ;;  %v1041_v32 = vrot.slane %v447_v28, 5  ;;  %v3372_v28 = vld [vmem:[%s2836_s23 + $0x84] sm:$0xff] }
  0xb8   : > { %v1715_v14 = vsel %vm1277_vm6, %v2931_v2, %v1612_v0 }
  0xb9   : > { %1195 = vrot.lane.b32.xlu0 %v3255_v34, %s2767_s25  ;;  %v769_v62 = vrot.slane %v768_v51, 4  ;;  %v773_v4 = vrot.slane %v771_v53, 5  ;;  %v1042_v51 = vsel %vm2821_vm4, %v1040_v22, %v1041_v32  ;;  %v2435_v22 = vrot.slane %v3333_v9, 9 }
  0xba   : > { %v1047_v32 = vrot.slane %v1045_v50, 4 }
  0xbb   : > { %v1182_v46 = vpop.permute.xlu0 %1181  ;;  %v774_v56 = vsel %vm2829_vm5, %v769_v62, %v773_v4  ;;  %v1582_v62 = vunpack.c.l.b16 %v1042_v51  ;;  %v3383_v4 = vld [vmem:[%s2836_s23 + $0x9c] sm:$0xf] }
  0xbc   : > { %v1289_v1 = vsel %vm1277_vm6, %v2936_v5, %v1182_v46  ;;  %1230 = vrot.lane.b32.xlu2 %v3320_v54, %s2766_s24  ;;  %v1152_v12 = vunpack.c.l.b16 %v774_v56  ;;  %v450_v46 = vld [vmem:[%s2836_s23 + $0x98] sm:$0x1] }
  0xbd   : > { %1265 = vrot.lane.b32.xlu1 %v3313_v21, %s2768_s26  ;;  %v1334_v52 = vsel %vm1326_vm7, %v1289_v1, %v3251_v45  ;;  %v764_v45 = vsel %vm2829_vm5, %v759_v18, %v763_v60  ;;  %v795_v58 = vshll.u32 %v450_v46, 16  ;;  %v1581_v18 = vunpack.c.l.b16 %v1039_v61 }
  0xbe   : > { %v3330_v24 = vpop.permute.xlu2 %1680  ;;  %v1151_v2 = vunpack.c.l.b16 %v764_v45 }
  0xbf   : > { %v1252_v6 = vpop.permute.xlu1 %1251 }
  0xc0   : > { %v1367_v5 = vsel %vm1359_vm8, %v1334_v52, %v1252_v6  ;;  %v3367_v33 = vpack.c.b16 %v1152_v12, %v1151_v2  ;;  %v3386_v52 = vld [vmem:[%s2836_s23 + $0xa0] sm:$0xf]  ;;  %v1601_v2 = vpack.c.b16 %v1582_v62, %v1581_v18  ;;  %v3431_v18 = vld [vmem:[%s2836_s23 + $0x90] sm:$0xff] }
  0xc1   : > { %1657 = vrot.lane.b32.xlu0 %v3313_v21, %s2766_s24  ;;  %2510 = vmatmul.msk.bf16.gmra.mxu0 %vm1403_vm9, %v1365_v48  ;;  %v779_v48 = vshll.u32 %v3333_v9, 16 }
  0xc2   : > { %2586 = vmatmul.msk.bf16.gmra.mxu2 %vm1403_vm9, %v1367_v5 }
  0xc3   : > { %v1644_v37 = vpop.permute.xlu0 %1643  ;;  %v781_v0 = vrot.slane %v779_v48, 5  ;;  %v813_v48 = vshrl.u32 %v3386_v52, 16 }
  0xc4   : > { %v1759_v63 = vsel %vm1326_vm7, %v1715_v14, %v1644_v37  ;;  %1692 = vrot.lane.b32.xlu2 %v1600_v13, %s2768_s26  ;;  %v797_v37 = vrot.slane %v795_v58, 5 }
  0xc5   : > { %v1791_v29 = vsel %vm1359_vm8, %v1759_v63, %v3276_v19  ;;  %1627 = vrot.lane.b32.xlu1 %v1600_v13, %s2767_s25  ;;  %v778_v19 = vrot.slane %v776_v16, 4  ;;  %v800_v16 = vshrl.u32 %v3383_v4, 16  ;;  %v809_v63 = vshll.u32 %v3386_v52, 16 }
  0xc6   : > { %2532 = vmatmul.msk.bf16.gmra.mxu1 %vm1403_vm9, %v1789_v17  ;;  %2640 = vmatmul.msk.bf16.gmra.mxu3 %vm1403_vm9, %v1791_v29  ;;  %v3362_v41 = vpop.permute.xlu2 %1220  ;;  %v787_v17 = vrot.slane %v785_v26, 5 }
  0xc7   : > { %v1614_v60 = vpop.permute.xlu1 %1613  ;;  %v782_v53 = vor.u32 %v781_v0, %v778_v19  ;;  %v1048_v19 = vrot.slane %v450_v46, 5  ;;  %v811_v0 = vrot.slane %v809_v63, 5 }
  0xc8   : > { %v792_v1 = vor.u32 %v791_v44, %v787_v17  ;;  %v1718_v26 = vsel %vm1277_vm6, %v2967_v38, %v1614_v60  ;;  %v802_v38 = vrot.slane %v800_v16, 4  ;;  %v815_v44 = vrot.slane %v813_v48, 4 }
  0xc9   : > { %1197 = vrot.lane.b32.xlu0 %v3313_v21, %s2767_s25  ;;  %v783_v45 = vrot.slane %v782_v53, 4  ;;  %v1049_v46 = vsel %vm2821_vm4, %v1047_v32, %v1048_v19 }
  0xca   : > { %v793_v14 = vrot.slane %v792_v1, 4  ;;  %v816_v53 = vor.u32 %v815_v44, %v811_v0 }
  0xcb   : > { %v1184_v47 = vpop.permute.xlu0 %1183 }
  0xcc   : > { %v1292_v59 = vsel %vm1277_vm6, %v2970_v42, %v1184_v47  ;;  %1232 = vrot.lane.b32.xlu2 %v3372_v28, %s2766_s24  ;;  %v798_v7 = vsel %vm2829_vm5, %v793_v14, %v797_v37  ;;  %v817_v14 = vrot.slane %v816_v53, 4 }
  0xcd   : > { %1267 = vrot.lane.b32.xlu1 %v3367_v33, %s2768_s26  ;;  %v1336_v6 = vsel %vm1326_vm7, %v1292_v59, %v3308_v43  ;;  %v803_v43 = vshll.u32 %v3383_v4, 16  ;;  %v1154_v47 = vunpack.c.l.b16 %v798_v7 }
  0xce   : > { %v3390_v42 = vpop.permute.xlu2 %1682 }
  0xcf   : > { %v1254_v13 = vpop.permute.xlu1 %1253  ;;  %v805_v60 = vrot.slane %v803_v43, 5 }
  0xd0   : > { %v1369_v56 = vsel %vm1359_vm8, %v1336_v6, %v1254_v13  ;;  %v1584_v13 = vunpack.c.l.b16 %v1049_v46 }
  0xd1   : > { %1659 = vrot.lane.b32.xlu0 %v3367_v33, %s2766_s24  ;;  %2511 = vmatmul.msk.bf16.gmra.mxu0 %vm1403_vm9, %v1367_v5  ;;  %v788_v5 = vsel %vm2829_vm5, %v783_v45, %v787_v17  ;;  %v806_v51 = vor.u32 %v805_v60, %v802_v38 }
  0xd2   : > { %2587 = vmatmul.msk.bf16.gmra.mxu2 %vm1403_vm9, %v1369_v56  ;;  %v1153_v17 = vunpack.c.l.b16 %v788_v5 }
  0xd3   : > { %v1646_v30 = vpop.permute.xlu0 %1645  ;;  %v807_v45 = vrot.slane %v806_v51, 4 }
  0xd4   : > { %v1761_v12 = vsel %vm1326_vm7, %v1718_v26, %v1646_v30  ;;  %1694 = vrot.lane.b32.xlu2 %v1601_v2, %s2768_s26  ;;  %v3428_v59 = vpack.c.b16 %v1154_v47, %v1153_v17 }
  0xd5   : > { %v1793_v40 = vsel %vm1359_vm8, %v1761_v12, %v3330_v24  ;;  %1629 = vrot.lane.b32.xlu1 %v1601_v2, %s2767_s25  ;;  %v3417_v24 = vld [vmem:[%s2836_s23 + $0xa4] sm:$0x1]  ;;  %v812_v30 = vsel %vm2829_vm5, %v807_v45, %v811_v0 }
  0xd6   : > { %2533 = vmatmul.msk.bf16.gmra.mxu1 %vm1403_vm9, %v1791_v29  ;;  %2641 = vmatmul.msk.bf16.gmra.mxu3 %vm1403_vm9, %v1793_v40  ;;  %v3419_v61 = vpop.permute.xlu2 %1222  ;;  %v1046_v29 = vsel %vm2821_vm4, %v2435_v22, %v1045_v50  ;;  %v819_v1 = vshll.u32 %v3417_v24, 16  ;;  %v3440_v50 = vld [vmem:[%s2836_s23 + $0xa8] sm:$0xf]  ;;  %v1052_v22 = vrot.slane %v3386_v52, 5  ;;  %v1155_v60 = vunpack.c.l.b16 %v812_v30 }
  0xd7   : > { %v1616_v9 = vpop.permute.xlu1 %1615  ;;  %v1583_v6 = vunpack.c.l.b16 %v1046_v29  ;;  %v824_v2 = vshrl.u32 %v3440_v50, 16  ;;  %v827_v12 = vshll.u32 %v3440_v50, 16  ;;  %v1055_v47 = vrot.slane %v3417_v24, 5 }
  0xd8   : > { %v821_v37 = vrot.slane %v819_v1, 5  ;;  %v1721_v5 = vsel %vm1277_vm6, %v3001_v10, %v1616_v9  ;;  %v2436_v10 = vrot.slane %v3383_v4, 9  ;;  %v1054_v17 = vrot.slane %v1052_v22, 4 }
  0xd9   : > { %1199 = vrot.lane.b32.xlu0 %v3367_v33, %s2767_s25  ;;  %v1602_v26 = vpack.c.b16 %v1584_v13, %v1583_v6  ;;  %v826_v44 = vrot.slane %v824_v2, 4  ;;  %v829_v52 = vrot.slane %v827_v12, 5  ;;  %v3486_v6 = vld [vmem:[%s2836_s23 + $0x9c] sm:$0xff]  ;;  %v3499_v2 = vld [vmem:[%s2836_s23 + $0xb4] sm:$0xf] }
  0xda   : > { %v1053_v1 = vsel %vm2821_vm4, %v2436_v10, %v1052_v22  ;;  %v1056_v24 = vsel %vm2821_vm4, %v1054_v17, %v1055_v47  ;;  %v3505_v12 = vld [vmem:[%s2836_s23 + $0xb8] sm:$0xf]  ;;  %v2438_v8 = vrot.slane %v3499_v2, 9 }
  0xdb   : > { %v1186_v58 = vpop.permute.xlu0 %1185  ;;  %v830_v51 = vor.u32 %v829_v52, %v826_v44  ;;  %v1585_v45 = vunpack.c.l.b16 %v1053_v1  ;;  %v861_v10 = vshrl.u32 %v3505_v12, 16  ;;  %v2437_v52 = vrot.slane %v3440_v50, 9 }
  0xdc   : > { %v1295_v62 = vsel %vm1277_vm6, %v3006_v11, %v1186_v58  ;;  %1234 = vrot.lane.b32.xlu2 %v3431_v18, %s2766_s24  ;;  %v3447_v11 = vld [vmem:[%s2836_s23 + $0xac] sm:$0xf] }
  0xdd   : > { %1269 = vrot.lane.b32.xlu1 %v3428_v59, %s2768_s26  ;;  %v1338_v16 = vsel %vm1326_vm7, %v1295_v62, %v3362_v41  ;;  %v822_v41 = vsel %vm2829_vm5, %v817_v14, %v821_v37  ;;  %v837_v32 = vshrl.u32 %v3447_v11, 16  ;;  %v1586_v14 = vunpack.c.l.b16 %v1056_v24 }
  0xde   : > { %v3444_v63 = vpop.permute.xlu2 %1684  ;;  %v1156_v0 = vunpack.c.l.b16 %v822_v41  ;;  %v831_v37 = vrot.slane %v830_v51, 4 }
  0xdf   : > { %v1256_v43 = vpop.permute.xlu1 %1255  ;;  %v839_v9 = vrot.slane %v837_v32, 4  ;;  %v1059_v32 = vrot.slane %v3447_v11, 5 }
  0xe0   : > { %v1371_v48 = vsel %vm1359_vm8, %v1338_v16, %v1256_v43  ;;  %v3479_v4 = vpack.c.b16 %v1156_v0, %v1155_v60  ;;  %v857_v0 = vshll.u32 %v3505_v12, 16 }
  0xe1   : > { %1661 = vrot.lane.b32.xlu0 %v3428_v59, %s2766_s24  ;;  %2512 = vmatmul.msk.bf16.gmra.mxu0 %vm1403_vm9, %v1369_v56  ;;  %v833_v56 = vshll.u32 %v3447_v11, 16  ;;  %v1061_v17 = vrot.slane %v1059_v32, 4  ;;  %v1060_v50 = vsel %vm2821_vm4, %v2437_v52, %v1059_v32 }
  0xe2   : > { %2588 = vmatmul.msk.bf16.gmra.mxu2 %vm1403_vm9, %v1371_v48  ;;  %v859_v51 = vrot.slane %v857_v0, 5 }
  0xe3   : > { %v1648_v7 = vpop.permute.xlu0 %1647 }
  0xe4   : > { %v1763_v19 = vsel %vm1326_vm7, %v1721_v5, %v1648_v7  ;;  %1696 = vrot.lane.b32.xlu2 %v1602_v26, %s2768_s26  ;;  %v1603_v5 = vpack.c.b16 %v1586_v14, %v1585_v45 }
  0xe5   : > { %v1795_v38 = vsel %vm1359_vm8, %v1763_v19, %v3390_v42  ;;  %1631 = vrot.lane.b32.xlu1 %v1602_v26, %s2767_s25  ;;  %v835_v42 = vrot.slane %v833_v56, 5  ;;  %v848_v19 = vshrl.u32 %v3499_v2, 16 }
  0xe6   : > { %2534 = vmatmul.msk.bf16.gmra.mxu1 %vm1403_vm9, %v1793_v40  ;;  %2642 = vmatmul.msk.bf16.gmra.mxu3 %vm1403_vm9, %v1795_v38  ;;  %v3474_v46 = vpop.permute.xlu2 %1224  ;;  %v456_v40 = vld [vmem:[%s2836_s23 + $0xb0] sm:$0x1] }
  0xe7   : > { %v1618_v29 = vpop.permute.xlu1 %1617  ;;  %v840_v58 = vor.u32 %v839_v9, %v835_v42  ;;  %v843_v62 = vshll.u32 %v456_v40, 16  ;;  %v1062_v47 = vrot.slane %v456_v40, 5 }
  0xe8   : > { %v1724_v7 = vsel %vm1277_vm6, %v3039_v55, %v1618_v29  ;;  %v850_v29 = vrot.slane %v848_v19, 4 }
  0xe9   : > { %1201 = vrot.lane.b32.xlu0 %v3428_v59, %s2767_s25  ;;  %v841_v16 = vrot.slane %v840_v58, 4  ;;  %v845_v43 = vrot.slane %v843_v62, 5  ;;  %v3536_v58 = vld [vmem:[%s2836_s23 + $0xa8] sm:$0xff]  ;;  %v1063_v40 = vsel %vm2821_vm4, %v1061_v17, %v1062_v47 }
  0xeb   : > { %v1188_v53 = vpop.permute.xlu0 %1187  ;;  %v846_v56 = vsel %vm2829_vm5, %v841_v16, %v845_v43  ;;  %v1588_v16 = vunpack.c.l.b16 %v1063_v40 }
  0xec   : > { %v1298_v13 = vsel %vm1277_vm6, %v3044_v57, %v1188_v53  ;;  %1236 = vrot.lane.b32.xlu2 %v3486_v6, %s2766_s24  ;;  %v1158_v11 = vunpack.c.l.b16 %v846_v56  ;;  %v459_v53 = vld [vmem:[%s2836_s23 + $0xbc] sm:$0x1] }
  0xed   : > { %1271 = vrot.lane.b32.xlu1 %v3479_v4, %s2768_s26  ;;  %v1340_v26 = vsel %vm1326_vm7, %v1298_v13, %v3419_v61  ;;  %v836_v61 = vsel %vm2829_vm5, %v831_v37, %v835_v42  ;;  %v867_v45 = vshll.u32 %v459_v53, 16  ;;  %v1587_v37 = vunpack.c.l.b16 %v1060_v50 }
  0xee   : > { %v3496_v41 = vpop.permute.xlu2 %1686  ;;  %v1157_v55 = vunpack.c.l.b16 %v836_v61 }
  0xef   : > { %v1258_v30 = vpop.permute.xlu1 %1257  ;;  %v869_v61 = vrot.slane %v867_v45, 5  ;;  %v1604_v32 = vpack.c.b16 %v1588_v16, %v1587_v37 }
  0xf0   : > { %v1373_v57 = vsel %vm1359_vm8, %v1340_v26, %v1258_v30  ;;  %v3531_v24 = vpack.c.b16 %v1158_v11, %v1157_v55  ;;  %v1069_v11 = vrot.slane %v459_v53, 5 }
  0xf1   : > { %1663 = vrot.lane.b32.xlu0 %v3479_v4, %s2766_s24  ;;  %2513 = vmatmul.msk.bf16.gmra.mxu0 %vm1403_vm9, %v1371_v48  ;;  %v851_v48 = vshll.u32 %v3499_v2, 16 }
  0xf2   : > { %2589 = vmatmul.msk.bf16.gmra.mxu2 %vm1403_vm9, %v1373_v57 }
  0xf3   : > { %v1650_v22 = vpop.permute.xlu0 %1649 }
  0xf4   : > { %v1765_v60 = vsel %vm1326_vm7, %v1724_v7, %v1650_v22  ;;  %1698 = vrot.lane.b32.xlu2 %v1603_v5, %s2768_s26 }
  0xf5   : > { %v1797_v44 = vsel %vm1359_vm8, %v1765_v60, %v3444_v63  ;;  %1633 = vrot.lane.b32.xlu1 %v1603_v5, %s2767_s25  ;;  %v853_v63 = vrot.slane %v851_v48, 5  ;;  %v1066_v48 = vrot.slane %v3505_v12, 5 }
  0xf6   : > { %2535 = vmatmul.msk.bf16.gmra.mxu1 %vm1403_vm9, %v1795_v38  ;;  %2643 = vmatmul.msk.bf16.gmra.mxu3 %vm1403_vm9, %v1797_v44  ;;  %v1227_v9 = vpop.permute.xlu2 %1226  ;;  %v863_v38 = vrot.slane %v861_v10, 4 }
  0xf7   : > { %v1620_v42 = vpop.permute.xlu1 %1619  ;;  %v854_v62 = vor.u32 %v853_v63, %v850_v29  ;;  %v1068_v55 = vrot.slane %v1066_v48, 4  ;;  %v1067_v17 = vsel %vm2821_vm4, %v2438_v8, %v1066_v48 }
  0xf8   : > { %v864_v13 = vor.u32 %v863_v38, %v859_v51  ;;  %v1727_v22 = vsel %vm1277_vm6, %v3078_v20, %v1620_v42  ;;  %v1669_v42 = vunpack.c.l.b16 %v1067_v17 }
  0xf9   : > { %1203 = vrot.lane.b32.xlu0 %v3479_v4, %s2767_s25  ;;  %v855_v30 = vrot.slane %v854_v62, 4  ;;  %v1070_v47 = vsel %vm2821_vm4, %v1068_v55, %v1069_v11 }
  0xfa   : > { %v865_v5 = vrot.slane %v864_v13, 4  ;;  %v1670_v29 = vunpack.c.l.b16 %v1070_v47  ;;  %v3605_v13 = vld [vmem:[%s4113_s4] ss:$0 sm:$0xff] }
  0xfb   : > { %v1190_v1 = vpop.permute.xlu0 %1189  ;;  %v860_v19 = vsel %vm2829_vm5, %v855_v30, %v859_v51 }
  0xfc   : > { %v1301_v14 = vsel %vm1277_vm6, %v3083_v39, %v1190_v1  ;;  %1238 = vrot.lane.b32.xlu2 %v3536_v58, %s2766_s24  ;;  %v870_v60 = vsel %vm2829_vm5, %v865_v5, %v869_v61  ;;  %v1242_v20 = vunpack.c.l.b16 %v860_v19  ;;  %v1671_v1 = vpack.c.b16 %v1670_v29, %v1669_v42 }
  0xfd   : > { %1273 = vrot.lane.b32.xlu1 %v3531_v24, %s2768_s26  ;;  %v1342_v43 = vsel %vm1326_vm7, %v1301_v14, %v3474_v46  ;;  %v1243_v0 = vunpack.c.l.b16 %v870_v60 }
  0xfe   : > { %v1689_v7 = vpop.permute.xlu2 %1688 }
  0xff   : > { %v1260_v26 = vpop.permute.xlu1 %1259  ;;  %v3570_v52 = vpack.c.b16 %v1243_v0, %v1242_v20 }
 0x100   : > { %v1375_v39 = vsel %vm1359_vm8, %v1342_v43, %v1260_v26 }
 0x101   : > { %1665 = vrot.lane.b32.xlu0 %v3531_v24, %s2766_s24  ;;  %2514 = vmatmul.msk.bf16.gmra.mxu0 %vm1403_vm9, %v1373_v57 }
 0x102   : > { %2590 = vmatmul.msk.bf16.gmra.mxu2 %vm1403_vm9, %v1375_v39 }
 0x103   : > { %v1652_v56 = vpop.permute.xlu0 %1651 }
 0x104   : > { %v1767_v46 = vsel %vm1326_vm7, %v1727_v22, %v1652_v56  ;;  %1700 = vrot.lane.b32.xlu2 %v1604_v32, %s2768_s26 }
 0x105   : > { %v1799_v57 = vsel %vm1359_vm8, %v1767_v46, %v3496_v41  ;;  %1635 = vrot.lane.b32.xlu1 %v1604_v32, %s2767_s25 }
 0x106   : > { %2536 = vmatmul.msk.bf16.gmra.mxu1 %vm1403_vm9, %v1797_v44  ;;  %2644 = vmatmul.msk.bf16.gmra.mxu3 %vm1403_vm9, %v1799_v57  ;;  %v1229_v12 = vpop.permute.xlu2 %1228  ;;  %v3573_v44 = vld [vmem:[%s2836_s23 + $0xb4] sm:$0xff] }
 0x107   : > { %v1622_v10 = vpop.permute.xlu1 %1621 }
 0x109   : > { %1205 = vrot.lane.b32.xlu0 %v3531_v24, %s2767_s25 }
 0x10b   : > { %v1192_v41 = vpop.permute.xlu0 %1191 }
 0x10c   : > { %v1304_v2 = vsel %vm1277_vm6, %v3134_v27, %v1192_v41  ;;  %1240 = vrot.lane.b32.xlu2 %v3573_v44, %s2766_s24  ;;  %v1730_v27 = vsel %vm1277_vm6, %v3129_v25, %v1622_v10 }
 0x10d   : > { %1275 = vrot.lane.b32.xlu1 %v3570_v52, %s2768_s26  ;;  %v1344_v63 = vsel %vm1326_vm7, %v1304_v2, %v1227_v9 }
 0x10e   : > { %v1691_v38 = vpop.permute.xlu2 %1690 }
 0x10f   : > { %v1262_v51 = vpop.permute.xlu1 %1261 }
 0x110   : > { %v1377_v3 = vsel %vm1359_vm8, %v1344_v63, %v1262_v51 }
 0x111   : > { %1667 = vrot.lane.b32.xlu0 %v3570_v52, %s2766_s24  ;;  %2515 = vmatmul.msk.bf16.gmra.mxu0 %vm1403_vm9, %v1375_v39 }
 0x112   : > { %2591 = vmatmul.msk.bf16.gmra.mxu2 %vm1403_vm9, %v1377_v3 }
 0x113   : > { %v1654_v53 = vpop.permute.xlu0 %1653 }
 0x114   : > { %v1769_v50 = vsel %vm1326_vm7, %v1730_v27, %v1654_v53  ;;  %1702 = vrot.lane.b32.xlu2 %v1671_v1, %s2768_s26 }
 0x115   : > { %v1801_v9 = vsel %vm1359_vm8, %v1769_v50, %v1689_v7  ;;  %2131 = vrot.lane.b32.xlu1 %v1671_v1, %s2767_s25 }
 0x116   : > { %2537 = vmatmul.msk.bf16.gmra.mxu1 %vm1403_vm9, %v1799_v57  ;;  %2645 = vmatmul.msk.bf16.gmra.mxu3 %vm1403_vm9, %v1801_v9  ;;  %v1231_v62 = vpop.permute.xlu2 %1230 }
 0x117   : > { %v1624_v40 = vpop.permute.xlu1 %1623 }
 0x119   : > { %1979 = vrot.lane.b32.xlu0 %v3570_v52, %s2767_s25 }
 0x11b   : > { %v1194_v25 = vpop.permute.xlu0 %1193 }
 0x11c   : > { %v1307_v45 = vsel %vm1277_vm6, %v3193_v36, %v1194_v25  ;;  %1984 = vrot.lane.b32.xlu2 %v3172_v15, %s2766_s24  ;;  %v1733_v15 = vsel %vm1277_vm6, %v3190_v35, %v1624_v40 }
 0x11d   : > { %v2167_v14 = vpop.f32.mrf.mxu3  ;;  %1989 = vrot.lane.b32.xlu1 %v2861_v31, %s2768_s26  ;;  %v1346_v43 = vsel %vm1326_vm7, %v1307_v45, %v1229_v12 }
 0x11e   : > { %v2168_v37 = vadd.f32 %v3605_v13, %v2167_v14  ;;  %v1445_v16 = vpop.f32.mrf.mxu0  ;;  %v1693_v5 = vpop.permute.xlu2 %1692 }
 0x11f   : > { %v1446_v36 = vadd.f32 %v3605_v13, %v1445_v16  ;;  %v1264_v26 = vpop.permute.xlu1 %1263 }
 0x120   : > { %2654 = vst.msk [vmem:[%s3612_s15 + $0x300] sm:$0xff] %vm1277_vm6, %v2168_v37  ;;  %v1379_v30 = vsel %vm1359_vm8, %v1346_v43, %v1264_v26 }
 0x121   : > { %2133 = vrot.lane.b32.xlu0 %v2861_v31, %s2766_s24  ;;  %1525 = vst.msk [vmem:[%s3612_s15] sm:$0xff] %vm1277_vm6, %v1446_v36  ;;  %2516 = vmatmul.msk.bf16.gmra.mxu0 %vm1403_vm9, %v1377_v3 }
 0x122   : > { %v2018_v61 = vpop.f32.mrf.mxu2  ;;  %2592 = vmatmul.msk.bf16.gmra.mxu2 %vm1403_vm9, %v1379_v30 }
 0x123   : > { %v2019_v39 = vadd.f32 %v3605_v13, %v2018_v61  ;;  %v1866_v7 = vpop.f32.mrf.mxu1  ;;  %v1656_v22 = vpop.permute.xlu0 %1655 }
 0x124   : > { %v1867_v31 = vadd.f32 %v3605_v13, %v1866_v7  ;;  %v1771_v56 = vsel %vm1326_vm7, %v1733_v15, %v1656_v22  ;;  %2138 = vrot.lane.b32.xlu2 %v2853_v23, %s2768_s26 }
 0x125   : > { %2600 = vst.msk [vmem:[%s3612_s15 + $0x200] sm:$0xff] %vm1277_vm6, %v2019_v39  ;;  %v1803_v32 = vsel %vm1359_vm8, %v1771_v56, %v1691_v38  ;;  %v2169_v35 = vpop.f32.mrf.mxu3 }
 0x126   : > { %2546 = vst.msk [vmem:[%s3612_s15 + $0x100] sm:$0xff] %vm1277_vm6, %v1867_v31  ;;  %2538 = vmatmul.msk.bf16.gmra.mxu1 %vm1403_vm9, %v1801_v9  ;;  %2646 = vmatmul.msk.bf16.gmra.mxu3 %vm1403_vm9, %v1803_v32  ;;  %v2170_v46 = vadd.f32 %v3605_v13, %v2169_v35  ;;  %v1447_v19 = vpop.f32.mrf.mxu0  ;;  %v1233_v57 = vpop.permute.xlu2 %1232 }
 0x127   : > { %v1448_v60 = vadd.f32 %v3605_v13, %v1447_v19  ;;  %v1626_v48 = vpop.permute.xlu1 %1625 }
 0x128   : > { %2655 = vst.msk [vmem:[%s3612_s15 + $0x308] sm:$0xff] %vm1277_vm6, %v2170_v46  ;;  %v1736_v42 = vsel %vm1277_vm6, %v3255_v34, %v1626_v48 }
 0x129   : > { %1526 = vst.msk [vmem:[%s3612_s15 + $0x8] sm:$0xff] %vm1277_vm6, %v1448_v60 }
 0x12a   : > { %v2020_v20 = vpop.f32.mrf.mxu2 }
 0x12b   : > { %v2021_v0 = vadd.f32 %v3605_v13, %v2020_v20  ;;  %v1868_v10 = vpop.f32.mrf.mxu1  ;;  %v1196_v8 = vpop.permute.xlu0 %1195 }
 0x12c   : > { %v1869_v55 = vadd.f32 %v3605_v13, %v1868_v10  ;;  %v1310_v23 = vsel %vm1277_vm6, %v3263_v49, %v1196_v8 }
 0x12d   : > { %2601 = vst.msk [vmem:[%s3612_s15 + $0x208] sm:$0xff] %vm1277_vm6, %v2021_v0  ;;  %v1348_v41 = vsel %vm1326_vm7, %v1310_v23, %v1231_v62 }
 0x12e   : > { %2547 = vst.msk [vmem:[%s3612_s15 + $0x108] sm:$0xff] %vm1277_vm6, %v1869_v55  ;;  %v1450_v11 = vpop.f32.mrf.mxu0  ;;  %v1695_v47 = vpop.permute.xlu2 %1694 }
 0x12f   : > { %v1451_v12 = vadd.f32 %v3605_v13, %v1450_v11  ;;  %v1266_v17 = vpop.permute.xlu1 %1265 }
 0x130   : > { %v1381_v2 = vsel %vm1359_vm8, %v1348_v41, %v1266_v17 }
 0x131   : > { %1527 = vst.msk [vmem:[%s3612_s15 + $0x10] sm:$0xff] %vm1277_vm6, %v1451_v12  ;;  %2517 = vmatmul.msk.bf16.gmra.mxu0 %vm1403_vm9, %v1379_v30 }
 0x132   : > { %2593 = vmatmul.msk.bf16.gmra.mxu2 %vm1403_vm9, %v1381_v2 }
 0x133   : > { %v1658_v49 = vpop.permute.xlu0 %1657  ;;  %v1871_v29 = vpop.f32.mrf.mxu1 }
 0x134   : > { %v1773_v63 = vsel %vm1326_vm7, %v1736_v42, %v1658_v49  ;;  %v1872_v51 = vadd.f32 %v3605_v13, %v1871_v29 }
 0x135   : > { %v2023_v3 = vpop.f32.mrf.mxu2  ;;  %v1805_v38 = vsel %vm1359_vm8, %v1773_v63, %v1693_v5 }
 0x136   : > { %2548 = vst.msk [vmem:[%s3612_s15 + $0x110] sm:$0xff] %vm1277_vm6, %v1872_v51  ;;  %2539 = vmatmul.msk.bf16.gmra.mxu1 %vm1403_vm9, %v1803_v32  ;;  %v2024_v27 = vadd.f32 %v3605_v13, %v2023_v3  ;;  %2647 = vmatmul.msk.bf16.gmra.mxu3 %vm1403_vm9, %v1805_v38  ;;  %v1452_v34 = vpop.f32.mrf.mxu0  ;;  %v1235_v40 = vpop.permute.xlu2 %1234 }
 0x137   : > { %v1453_v53 = vadd.f32 %v3605_v13, %v1452_v34  ;;  %v1628_v1 = vpop.permute.xlu1 %1627 }
 0x138   : > { %2602 = vst.msk [vmem:[%s3612_s15 + $0x210] sm:$0xff] %vm1277_vm6, %v2024_v27  ;;  %v1739_v39 = vsel %vm1277_vm6, %v3313_v21, %v1628_v1 }
 0x139   : > { %v2172_v50 = vpop.f32.mrf.mxu3  ;;  %1528 = vst.msk [vmem:[%s3612_s15 + $0x18] sm:$0xff] %vm1277_vm6, %v1453_v53 }
 0x13a   : > { %v2173_v9 = vadd.f32 %v3605_v13, %v2172_v50 }
 0x13b   : > { %v1198_v62 = vpop.permute.xlu0 %1197  ;;  %v1873_v25 = vpop.f32.mrf.mxu1 }
 0x13c   : > { %2656 = vst.msk [vmem:[%s3612_s15 + $0x310] sm:$0xff] %vm1277_vm6, %v2173_v9  ;;  %v1874_v45 = vadd.f32 %v3605_v13, %v1873_v25  ;;  %v1313_v37 = vsel %vm1277_vm6, %v3320_v54, %v1198_v62 }
 0x13d   : > { %v2025_v14 = vpop.f32.mrf.mxu2  ;;  %v1350_v26 = vsel %vm1326_vm7, %v1313_v37, %v1233_v57 }
 0x13e   : > { %2549 = vst.msk [vmem:[%s3612_s15 + $0x118] sm:$0xff] %vm1277_vm6, %v1874_v45  ;;  %v2026_v16 = vadd.f32 %v3605_v13, %v2025_v14  ;;  %v1455_v43 = vpop.f32.mrf.mxu0  ;;  %v1697_v15 = vpop.permute.xlu2 %1696 }
 0x13f   : > { %v1456_v36 = vadd.f32 %v3605_v13, %v1455_v43  ;;  %v1268_v30 = vpop.permute.xlu1 %1267 }
 0x140   : > { %2603 = vst.msk [vmem:[%s3612_s15 + $0x218] sm:$0xff] %vm1277_vm6, %v2026_v16  ;;  %v1383_v54 = vsel %vm1359_vm8, %v1350_v26, %v1268_v30 }
 0x141   : > { %v2174_v5 = vpop.f32.mrf.mxu3  ;;  %1529 = vst.msk [vmem:[%s3612_s15 + $0x20] sm:$0xff] %vm1277_vm6, %v1456_v36  ;;  %2518 = vmatmul.msk.bf16.gmra.mxu0 %vm1403_vm9, %v1381_v2 }
 0x142   : > { %v2175_v61 = vadd.f32 %v3605_v13, %v2174_v5  ;;  %2594 = vmatmul.msk.bf16.gmra.mxu2 %vm1403_vm9, %v1383_v54 }
 0x143   : > { %v1660_v7 = vpop.permute.xlu0 %1659  ;;  %v1876_v22 = vpop.f32.mrf.mxu1 }
 0x144   : > { %2657 = vst.msk [vmem:[%s3612_s15 + $0x318] sm:$0xff] %vm1277_vm6, %v2175_v61  ;;  %v1775_v31 = vsel %vm1326_vm7, %v1739_v39, %v1660_v7  ;;  %v1877_v56 = vadd.f32 %v3605_v13, %v1876_v22 }
 0x145   : > { %v2028_v32 = vpop.f32.mrf.mxu2  ;;  %v1807_v35 = vsel %vm1359_vm8, %v1775_v31, %v1695_v47 }
 0x146   : > { %2550 = vst.msk [vmem:[%s3612_s15 + $0x120] sm:$0xff] %vm1277_vm6, %v1877_v56  ;;  %2540 = vmatmul.msk.bf16.gmra.mxu1 %vm1403_vm9, %v1805_v38  ;;  %v2029_v21 = vadd.f32 %v3605_v13, %v2028_v32  ;;  %2648 = vmatmul.msk.bf16.gmra.mxu3 %vm1403_vm9, %v1807_v35  ;;  %v1457_v46 = vpop.f32.mrf.mxu0  ;;  %v1237_v8 = vpop.permute.xlu2 %1236 }
 0x147   : > { %v1458_v19 = vadd.f32 %v3605_v13, %v1457_v46  ;;  %v1630_v60 = vpop.permute.xlu1 %1629 }
 0x148   : > { %2604 = vst.msk [vmem:[%s3612_s15 + $0x220] sm:$0xff] %vm1277_vm6, %v2029_v21  ;;  %v1742_v49 = vsel %vm1277_vm6, %v3367_v33, %v1630_v60 }
 0x149   : > { %v2177_v48 = vpop.f32.mrf.mxu3  ;;  %1530 = vst.msk [vmem:[%s3612_s15 + $0x28] sm:$0xff] %vm1277_vm6, %v1458_v19 }
 0x14a   : > { %v2178_v57 = vadd.f32 %v3605_v13, %v2177_v48 }
 0x14b   : > { %v1200_v20 = vpop.permute.xlu0 %1199  ;;  %v1878_v0 = vpop.f32.mrf.mxu1 }
 0x14c   : > { %2658 = vst.msk [vmem:[%s3612_s15 + $0x320] sm:$0xff] %vm1277_vm6, %v2178_v57  ;;  %v1879_v10 = vadd.f32 %v3605_v13, %v1878_v0  ;;  %v1316_v23 = vsel %vm1277_vm6, %v3372_v28, %v1200_v20 }
 0x14d   : > { %v2030_v55 = vpop.f32.mrf.mxu2  ;;  %v1352_v17 = vsel %vm1326_vm7, %v1316_v23, %v1235_v40 }
 0x14e   : > { %2551 = vst.msk [vmem:[%s3612_s15 + $0x128] sm:$0xff] %vm1277_vm6, %v1879_v10  ;;  %v2031_v11 = vadd.f32 %v3605_v13, %v2030_v55  ;;  %v1460_v12 = vpop.f32.mrf.mxu0  ;;  %v1699_v34 = vpop.permute.xlu2 %1698 }
 0x14f   : > { %v1461_v41 = vadd.f32 %v3605_v13, %v1460_v12  ;;  %v1270_v47 = vpop.permute.xlu1 %1269 }
 0x150   : > { %2605 = vst.msk [vmem:[%s3612_s15 + $0x228] sm:$0xff] %vm1277_vm6, %v2031_v11  ;;  %v1385_v28 = vsel %vm1359_vm8, %v1352_v17, %v1270_v47 }
 0x151   : > { %v2179_v2 = vpop.f32.mrf.mxu3  ;;  %1531 = vst.msk [vmem:[%s3612_s15 + $0x30] sm:$0xff] %vm1277_vm6, %v1461_v41  ;;  %2519 = vmatmul.msk.bf16.gmra.mxu0 %vm1403_vm9, %v1383_v54 }
 0x152   : > { %v2180_v42 = vadd.f32 %v3605_v13, %v2179_v2  ;;  %2595 = vmatmul.msk.bf16.gmra.mxu2 %vm1403_vm9, %v1385_v28 }
 0x153   : > { %v1662_v29 = vpop.permute.xlu0 %1661  ;;  %v1881_v63 = vpop.f32.mrf.mxu1 }
 0x154   : > { %2659 = vst.msk [vmem:[%s3612_s15 + $0x328] sm:$0xff] %vm1277_vm6, %v2180_v42  ;;  %v1777_v51 = vsel %vm1326_vm7, %v1742_v49, %v1662_v29  ;;  %v1882_v3 = vadd.f32 %v3605_v13, %v1881_v63 }
 0x155   : > { %v2033_v38 = vpop.f32.mrf.mxu2  ;;  %v1809_v27 = vsel %vm1359_vm8, %v1777_v51, %v1697_v15 }
 0x156   : > { %2552 = vst.msk [vmem:[%s3612_s15 + $0x130] sm:$0xff] %vm1277_vm6, %v1882_v3  ;;  %2541 = vmatmul.msk.bf16.gmra.mxu1 %vm1403_vm9, %v1807_v35  ;;  %v2034_v33 = vadd.f32 %v3605_v13, %v2033_v38  ;;  %2649 = vmatmul.msk.bf16.gmra.mxu3 %vm1403_vm9, %v1809_v27  ;;  %v1462_v53 = vpop.f32.mrf.mxu0  ;;  %v1239_v26 = vpop.permute.xlu2 %1238 }
 0x157   : > { %v1463_v1 = vadd.f32 %v3605_v13, %v1462_v53  ;;  %v1632_v50 = vpop.permute.xlu1 %1631 }
 0x158   : > { %2606 = vst.msk [vmem:[%s3612_s15 + $0x230] sm:$0xff] %vm1277_vm6, %v2034_v33  ;;  %v1745_v15 = vsel %vm1277_vm6, %v3428_v59, %v1632_v50 }
 0x159   : > { %v2182_v9 = vpop.f32.mrf.mxu3  ;;  %1532 = vst.msk [vmem:[%s3612_s15 + $0x38] sm:$0xff] %vm1277_vm6, %v1463_v1 }
 0x15a   : > { %v2183_v40 = vadd.f32 %v3605_v13, %v2182_v9 }
 0x15b   : > { %v1202_v62 = vpop.permute.xlu0 %1201  ;;  %v1883_v25 = vpop.f32.mrf.mxu1 }
 0x15c   : > { %2660 = vst.msk [vmem:[%s3612_s15 + $0x330] sm:$0xff] %vm1277_vm6, %v2183_v40  ;;  %v1884_v45 = vadd.f32 %v3605_v13, %v1883_v25  ;;  %v1319_v37 = vsel %vm1277_vm6, %v3431_v18, %v1202_v62 }
 0x15d   : > { %v2035_v14 = vpop.f32.mrf.mxu2  ;;  %v1354_v30 = vsel %vm1326_vm7, %v1319_v37, %v1237_v8 }
 0x15e   : > { %2553 = vst.msk [vmem:[%s3612_s15 + $0x138] sm:$0xff] %vm1277_vm6, %v1884_v45  ;;  %v2036_v16 = vadd.f32 %v3605_v13, %v2035_v14  ;;  %v1465_v43 = vpop.f32.mrf.mxu0  ;;  %v1701_v48 = vpop.permute.xlu2 %1700 }
 0x15f   : > { %v1466_v36 = vadd.f32 %v3605_v13, %v1465_v43  ;;  %v1272_v5 = vpop.permute.xlu1 %1271 }
 0x160   : > { %2607 = vst.msk [vmem:[%s3612_s15 + $0x238] sm:$0xff] %vm1277_vm6, %v2036_v16  ;;  %v1387_v18 = vsel %vm1359_vm8, %v1354_v30, %v1272_v5 }
 0x161   : > { %v2184_v61 = vpop.f32.mrf.mxu3  ;;  %1533 = vst.msk [vmem:[%s3612_s15 + $0x40] sm:$0xff] %vm1277_vm6, %v1466_v36  ;;  %2520 = vmatmul.msk.bf16.gmra.mxu0 %vm1403_vm9, %v1385_v28 }
 0x162   : > { %v2185_v54 = vadd.f32 %v3605_v13, %v2184_v61  ;;  %2596 = vmatmul.msk.bf16.gmra.mxu2 %vm1403_vm9, %v1387_v18 }
 0x163   : > { %v1664_v39 = vpop.permute.xlu0 %1663  ;;  %v1886_v7 = vpop.f32.mrf.mxu1 }
 0x164   : > { %2661 = vst.msk [vmem:[%s3612_s15 + $0x338] sm:$0xff] %vm1277_vm6, %v2185_v54  ;;  %v1779_v22 = vsel %vm1326_vm7, %v1745_v15, %v1664_v39  ;;  %v1887_v31 = vadd.f32 %v3605_v13, %v1886_v7 }
 0x165   : > { %v1811_v56 = vsel %vm1359_vm8, %v1779_v22, %v1699_v34  ;;  %v2038_v32 = vpop.f32.mrf.mxu2 }
 0x166   : > { %2554 = vst.msk [vmem:[%s3612_s15 + $0x140] sm:$0xff] %vm1277_vm6, %v1887_v31  ;;  %2542 = vmatmul.msk.bf16.gmra.mxu1 %vm1403_vm9, %v1809_v27  ;;  %v2039_v59 = vadd.f32 %v3605_v13, %v2038_v32  ;;  %2650 = vmatmul.msk.bf16.gmra.mxu3 %vm1403_vm9, %v1811_v56  ;;  %v1467_v35 = vpop.f32.mrf.mxu0  ;;  %v1241_v63 = vpop.permute.xlu2 %1240 }
 0x167   : > { %v1468_v21 = vadd.f32 %v3605_v13, %v1467_v35  ;;  %v1634_v46 = vpop.permute.xlu1 %1633 }
 0x168   : > { %2608 = vst.msk [vmem:[%s3612_s15 + $0x240] sm:$0xff] %vm1277_vm6, %v2039_v59  ;;  %v1748_v2 = vsel %vm1277_vm6, %v3479_v4, %v1634_v46 }
 0x169   : > { %v2187_v19 = vpop.f32.mrf.mxu3  ;;  %1534 = vst.msk [vmem:[%s3612_s15 + $0x48] sm:$0xff] %vm1277_vm6, %v1468_v21 }
 0x16a   : > { %v2188_v60 = vadd.f32 %v3605_v13, %v2187_v19 }
 0x16b   : > { %v1204_v57 = vpop.permute.xlu0 %1203  ;;  %v1888_v20 = vpop.f32.mrf.mxu1 }
 0x16c   : > { %2662 = vst.msk [vmem:[%s3612_s15 + $0x340] sm:$0xff] %vm1277_vm6, %v2188_v60  ;;  %v1889_v0 = vadd.f32 %v3605_v13, %v1888_v20  ;;  %v1322_v8 = vsel %vm1277_vm6, %v3486_v6, %v1204_v57 }
 0x16d   : > { %v2040_v10 = vpop.f32.mrf.mxu2  ;;  %v1356_v12 = vsel %vm1326_vm7, %v1322_v8, %v1239_v26 }
 0x16e   : > { %2555 = vst.msk [vmem:[%s3612_s15 + $0x148] sm:$0xff] %vm1277_vm6, %v1889_v0  ;;  %v2041_v55 = vadd.f32 %v3605_v13, %v2040_v10  ;;  %v1470_v23 = vpop.f32.mrf.mxu0  ;;  %v1703_v45 = vpop.permute.xlu2 %1702 }
 0x16f   : > { %v1471_v11 = vadd.f32 %v3605_v13, %v1470_v23  ;;  %v1274_v41 = vpop.permute.xlu1 %1273 }
 0x170   : > { %2609 = vst.msk [vmem:[%s3612_s15 + $0x248] sm:$0xff] %vm1277_vm6, %v2041_v55  ;;  %v1389_v47 = vsel %vm1359_vm8, %v1356_v12, %v1274_v41 }
 0x171   : > { %v2189_v17 = vpop.f32.mrf.mxu3  ;;  %1535 = vst.msk [vmem:[%s3612_s15 + $0x50] sm:$0xff] %vm1277_vm6, %v1471_v11  ;;  %2521 = vmatmul.msk.bf16.gmra.mxu0 %vm1403_vm9, %v1387_v18 }
 0x172   : > { %v2190_v6 = vadd.f32 %v3605_v13, %v2189_v17  ;;  %2597 = vmatmul.msk.bf16.gmra.mxu2 %vm1403_vm9, %v1389_v47 }
 0x173   : > { %v1666_v42 = vpop.permute.xlu0 %1665  ;;  %v1891_v28 = vpop.f32.mrf.mxu1 }
 0x174   : > { %2663 = vst.msk [vmem:[%s3612_s15 + $0x348] sm:$0xff] %vm1277_vm6, %v2190_v6  ;;  %v1781_v49 = vsel %vm1326_vm7, %v1748_v2, %v1666_v42  ;;  %v1892_v29 = vadd.f32 %v3605_v13, %v1891_v28 }
 0x175   : > { %v1813_v51 = vsel %vm1359_vm8, %v1781_v49, %v1701_v48  ;;  %v2043_v3 = vpop.f32.mrf.mxu2 }
 0x176   : > { %2556 = vst.msk [vmem:[%s3612_s15 + $0x150] sm:$0xff] %vm1277_vm6, %v1892_v29  ;;  %2543 = vmatmul.msk.bf16.gmra.mxu1 %vm1403_vm9, %v1811_v56  ;;  %v2044_v4 = vadd.f32 %v3605_v13, %v2043_v3  ;;  %2651 = vmatmul.msk.bf16.gmra.mxu3 %vm1403_vm9, %v1813_v51  ;;  %v1472_v38 = vpop.f32.mrf.mxu0  ;;  %v1985_v31 = vpop.permute.xlu2 %1984 }
 0x177   : > { %v1473_v27 = vadd.f32 %v3605_v13, %v1472_v38  ;;  %v1636_v33 = vpop.permute.xlu1 %1635 }
 0x178   : > { %2610 = vst.msk [vmem:[%s3612_s15 + $0x250] sm:$0xff] %vm1277_vm6, %v2044_v4  ;;  %v1751_v30 = vsel %vm1277_vm6, %v3531_v24, %v1636_v33 }
 0x179   : > { %v2192_v34 = vpop.f32.mrf.mxu3  ;;  %1536 = vst.msk [vmem:[%s3612_s15 + $0x58] sm:$0xff] %vm1277_vm6, %v1473_v27 }
 0x17a   : > { %v2193_v53 = vadd.f32 %v3605_v13, %v2192_v34 }
 0x17b   : > { %v1206_v1 = vpop.permute.xlu0 %1205  ;;  %v1893_v50 = vpop.f32.mrf.mxu1 }
 0x17c   : > { %2664 = vst.msk [vmem:[%s3612_s15 + $0x350] sm:$0xff] %vm1277_vm6, %v2193_v53  ;;  %v1894_v9 = vadd.f32 %v3605_v13, %v1893_v50  ;;  %v1325_v62 = vsel %vm1277_vm6, %v3536_v58, %v1206_v1 }
 0x17d   : > { %v2045_v40 = vpop.f32.mrf.mxu2  ;;  %v1358_v16 = vsel %vm1326_vm7, %v1325_v62, %v1241_v63 }
 0x17e   : > { %2557 = vst.msk [vmem:[%s3612_s15 + $0x158] sm:$0xff] %vm1277_vm6, %v1894_v9  ;;  %v2046_v25 = vadd.f32 %v3605_v13, %v2045_v40  ;;  %v1475_v14 = vpop.f32.mrf.mxu0  ;;  %v2139_v23 = vpop.permute.xlu2 %2138 }
 0x17f   : > { %v1476_v37 = vadd.f32 %v3605_v13, %v1475_v14  ;;  %v1276_v43 = vpop.permute.xlu1 %1275 }
 0x180   : > { %2611 = vst.msk [vmem:[%s3612_s15 + $0x258] sm:$0xff] %vm1277_vm6, %v2046_v25  ;;  %v1391_v58 = vsel %vm1359_vm8, %v1358_v16, %v1276_v43 }
 0x181   : > { %v2194_v36 = vpop.f32.mrf.mxu3  ;;  %1537 = vst.msk [vmem:[%s3612_s15 + $0x60] sm:$0xff] %vm1277_vm6, %v1476_v37  ;;  %2522 = vmatmul.msk.bf16.gmra.mxu0 %vm1403_vm9, %v1389_v47 }
 0x182   : > { %v2195_v26 = vadd.f32 %v3605_v13, %v2194_v36  ;;  %2598 = vmatmul.msk.bf16.gmra.mxu2 %vm1403_vm9, %v1391_v58 }
 0x183   : > { %v1668_v5 = vpop.permute.xlu0 %1667  ;;  %v1896_v61 = vpop.f32.mrf.mxu1 }
 0x184   : > { %2665 = vst.msk [vmem:[%s3612_s15 + $0x358] sm:$0xff] %vm1277_vm6, %v2195_v26  ;;  %v1783_v18 = vsel %vm1326_vm7, %v1751_v30, %v1668_v5  ;;  %v1897_v54 = vadd.f32 %v3605_v13, %v1896_v61 }
 0x185   : > { %v1815_v15 = vsel %vm1359_vm8, %v1783_v18, %v1703_v45  ;;  %v2048_v39 = vpop.f32.mrf.mxu2 }
 0x186   : > { %2558 = vst.msk [vmem:[%s3612_s15 + $0x160] sm:$0xff] %vm1277_vm6, %v1897_v54  ;;  %2544 = vmatmul.msk.bf16.gmra.mxu1 %vm1403_vm9, %v1813_v51  ;;  %v2049_v24 = vadd.f32 %v3605_v13, %v2048_v39  ;;  %2652 = vmatmul.msk.bf16.gmra.mxu3 %vm1403_vm9, %v1815_v15  ;;  %v1477_v7 = vpop.f32.mrf.mxu0 }
 0x187   : > { %v1478_v22 = vadd.f32 %v3605_v13, %v1477_v7  ;;  %v2132_v56 = vpop.permute.xlu1 %2131 }
 0x188   : > { %2612 = vst.msk [vmem:[%s3612_s15 + $0x260] sm:$0xff] %vm1277_vm6, %v2049_v24  ;;  %v2142_v11 = vsel %vm1277_vm6, %v3570_v52, %v2132_v56 }
 0x189   : > { %v2197_v32 = vpop.f32.mrf.mxu3  ;;  %1538 = vst.msk [vmem:[%s3612_s15 + $0x68] sm:$0xff] %vm1277_vm6, %v1478_v22 }
 0x18a   : > { %v2198_v59 = vadd.f32 %v3605_v13, %v2197_v32 }
 0x18b   : > { %v1980_v35 = vpop.permute.xlu0 %1979  ;;  %v1898_v21 = vpop.f32.mrf.mxu1 }
 0x18c   : > { %2666 = vst.msk [vmem:[%s3612_s15 + $0x360] sm:$0xff] %vm1277_vm6, %v2198_v59  ;;  %v1899_v46 = vadd.f32 %v3605_v13, %v1898_v21  ;;  %v1993_v60 = vsel %vm1277_vm6, %v3573_v44, %v1980_v35 }
 0x18d   : > { %v2050_v19 = vpop.f32.mrf.mxu2  ;;  %v1995_v0 = vsel %vm1326_vm7, %v1993_v60, %v1985_v31 }
 0x18e   : > { %2559 = vst.msk [vmem:[%s3612_s15 + $0x168] sm:$0xff] %vm1277_vm6, %v1899_v46  ;;  %v2051_v48 = vadd.f32 %v3605_v13, %v2050_v19  ;;  %v1480_v57 = vpop.f32.mrf.mxu0 }
 0x18f   : > { %v1481_v20 = vadd.f32 %v3605_v13, %v1480_v57  ;;  %v1990_v10 = vpop.permute.xlu1 %1989 }
 0x190   : > { %2613 = vst.msk [vmem:[%s3612_s15 + $0x268] sm:$0xff] %vm1277_vm6, %v2051_v48  ;;  %v1997_v55 = vsel %vm1359_vm8, %v1995_v0, %v1990_v10 }
 0x191   : > { %v2199_v8 = vpop.f32.mrf.mxu3  ;;  %1539 = vst.msk [vmem:[%s3612_s15 + $0x70] sm:$0xff] %vm1277_vm6, %v1481_v20  ;;  %2523 = vmatmul.msk.bf16.gmra.mxu0 %vm1403_vm9, %v1391_v58 }
 0x192   : > { %v2200_v44 = vadd.f32 %v3605_v13, %v2199_v8  ;;  %2599 = vmatmul.msk.bf16.gmra.mxu2 %vm1403_vm9, %v1997_v55 }
 0x193   : > { %v2134_v12 = vpop.permute.xlu0 %2133  ;;  %v1901_v41 = vpop.f32.mrf.mxu1 }
 0x194   : > { %2667 = vst.msk [vmem:[%s3612_s15 + $0x368] sm:$0xff] %vm1277_vm6, %v2200_v44  ;;  %v2144_v17 = vsel %vm1326_vm7, %v2142_v11, %v2134_v12  ;;  %v1902_v47 = vadd.f32 %v3605_v13, %v1901_v41 }
 0x195   : > { %v2146_v6 = vsel %vm1359_vm8, %v2144_v17, %v2139_v23  ;;  %v2053_v2 = vpop.f32.mrf.mxu2 }
 0x196   : > { %2560 = vst.msk [vmem:[%s3612_s15 + $0x170] sm:$0xff] %vm1277_vm6, %v1902_v47  ;;  %2545 = vmatmul.msk.bf16.gmra.mxu1 %vm1403_vm9, %v1815_v15  ;;  %v2054_v52 = vadd.f32 %v3605_v13, %v2053_v2  ;;  %2653 = vmatmul.msk.bf16.gmra.mxu3 %vm1403_vm9, %v2146_v6  ;;  %v1482_v42 = vpop.f32.mrf.mxu0 }
 0x197   : > { %v1483_v28 = vadd.f32 %v3605_v13, %v1482_v42 }
 0x198   : > { %2614 = vst.msk [vmem:[%s3612_s15 + $0x270] sm:$0xff] %vm1277_vm6, %v2054_v52 }
 0x199   : > { %v2202_v49 = vpop.f32.mrf.mxu3  ;;  %1540 = vst.msk [vmem:[%s3612_s15 + $0x78] sm:$0xff] %vm1277_vm6, %v1483_v28 }
 0x19a   : > { %v2203_v29 = vadd.f32 %v3605_v13, %v2202_v49 }
 0x19b   : > { %v1903_v63 = vpop.f32.mrf.mxu1 }
 0x19c   : > { %2668 = vst.msk [vmem:[%s3612_s15 + $0x370] sm:$0xff] %vm1277_vm6, %v2203_v29  ;;  %v1904_v51 = vadd.f32 %v3605_v13, %v1903_v63 }
 0x19d   : > { %v2055_v3 = vpop.f32.mrf.mxu2 }
 0x19e   : > { %2561 = vst.msk [vmem:[%s3612_s15 + $0x178] sm:$0xff] %vm1277_vm6, %v1904_v51  ;;  %v2056_v4 = vadd.f32 %v3605_v13, %v2055_v3  ;;  %v1485_v38 = vpop.f32.mrf.mxu0 }
 0x19f   : > { %v1486_v27 = vadd.f32 %v3605_v13, %v1485_v38 }
 0x1a0   : > { %2615 = vst.msk [vmem:[%s3612_s15 + $0x278] sm:$0xff] %vm1277_vm6, %v2056_v4 }
 0x1a1   : > { %v2204_v33 = vpop.f32.mrf.mxu3  ;;  %1541 = vst.msk [vmem:[%s3612_s15 + $0x80] sm:$0xff] %vm1277_vm6, %v1486_v27 }
 0x1a2   : > { %v2205_v34 = vadd.f32 %v3605_v13, %v2204_v33 }
 0x1a3   : > { %v1906_v53 = vpop.f32.mrf.mxu1 }
 0x1a4   : > { %2669 = vst.msk [vmem:[%s3612_s15 + $0x378] sm:$0xff] %vm1277_vm6, %v2205_v34  ;;  %v1907_v1 = vadd.f32 %v3605_v13, %v1906_v53 }
 0x1a5   : > { %v2058_v50 = vpop.f32.mrf.mxu2 }
 0x1a6   : > { %2562 = vst.msk [vmem:[%s3612_s15 + $0x180] sm:$0xff] %vm1277_vm6, %v1907_v1  ;;  %v2059_v9 = vadd.f32 %v3605_v13, %v2058_v50  ;;  %v1487_v40 = vpop.f32.mrf.mxu0 }
 0x1a7   : > { %v1488_v62 = vadd.f32 %v3605_v13, %v1487_v40 }
 0x1a8   : > { %2616 = vst.msk [vmem:[%s3612_s15 + $0x280] sm:$0xff] %vm1277_vm6, %v2059_v9 }
 0x1a9   : > { %v2207_v25 = vpop.f32.mrf.mxu3  ;;  %1542 = vst.msk [vmem:[%s3612_s15 + $0x88] sm:$0xff] %vm1277_vm6, %v1488_v62 }
 0x1aa   : > { %v2208_v45 = vadd.f32 %v3605_v13, %v2207_v25 }
 0x1ab   : > { %v1908_v14 = vpop.f32.mrf.mxu1 }
 0x1ac   : > { %2670 = vst.msk [vmem:[%s3612_s15 + $0x380] sm:$0xff] %vm1277_vm6, %v2208_v45  ;;  %v1909_v37 = vadd.f32 %v3605_v13, %v1908_v14 }
 0x1ad   : > { %v2060_v16 = vpop.f32.mrf.mxu2 }
 0x1ae   : > { %2563 = vst.msk [vmem:[%s3612_s15 + $0x188] sm:$0xff] %vm1277_vm6, %v1909_v37  ;;  %v2061_v43 = vadd.f32 %v3605_v13, %v2060_v16  ;;  %v1490_v36 = vpop.f32.mrf.mxu0 }
 0x1af   : > { %v1491_v58 = vadd.f32 %v3605_v13, %v1490_v36 }
 0x1b0   : > { %2617 = vst.msk [vmem:[%s3612_s15 + $0x288] sm:$0xff] %vm1277_vm6, %v2061_v43 }
 0x1b1   : > { %v2209_v26 = vpop.f32.mrf.mxu3  ;;  %1543 = vst.msk [vmem:[%s3612_s15 + $0x90] sm:$0xff] %vm1277_vm6, %v1491_v58 }
 0x1b2   : > { %v2210_v30 = vadd.f32 %v3605_v13, %v2209_v26 }
 0x1b3   : > { %v1911_v5 = vpop.f32.mrf.mxu1 }
 0x1b4   : > { %2671 = vst.msk [vmem:[%s3612_s15 + $0x388] sm:$0xff] %vm1277_vm6, %v2210_v30  ;;  %v1912_v61 = vadd.f32 %v3605_v13, %v1911_v5 }
 0x1b5   : > { %v2063_v18 = vpop.f32.mrf.mxu2 }
 0x1b6   : > { %2564 = vst.msk [vmem:[%s3612_s15 + $0x190] sm:$0xff] %vm1277_vm6, %v1912_v61  ;;  %v2064_v54 = vadd.f32 %v3605_v13, %v2063_v18  ;;  %v1492_v15 = vpop.f32.mrf.mxu0 }
 0x1b7   : > { %v1493_v39 = vadd.f32 %v3605_v13, %v1492_v15 }
 0x1b8   : > { %2618 = vst.msk [vmem:[%s3612_s15 + $0x290] sm:$0xff] %vm1277_vm6, %v2064_v54 }
 0x1b9   : > { %v2212_v24 = vpop.f32.mrf.mxu3  ;;  %1544 = vst.msk [vmem:[%s3612_s15 + $0x98] sm:$0xff] %vm1277_vm6, %v1493_v39 }
 0x1ba   : > { %v2213_v7 = vadd.f32 %v3605_v13, %v2212_v24 }
 0x1bb   : > { %v1913_v22 = vpop.f32.mrf.mxu1 }
 0x1bc   : > { %2672 = vst.msk [vmem:[%s3612_s15 + $0x390] sm:$0xff] %vm1277_vm6, %v2213_v7  ;;  %v1914_v31 = vadd.f32 %v3605_v13, %v1913_v22 }
 0x1bd   : > { %v2065_v56 = vpop.f32.mrf.mxu2 }
 0x1be   : > { %2565 = vst.msk [vmem:[%s3612_s15 + $0x198] sm:$0xff] %vm1277_vm6, %v1914_v31  ;;  %v2066_v32 = vadd.f32 %v3605_v13, %v2065_v56  ;;  %v1495_v59 = vpop.f32.mrf.mxu0 }
 0x1bf   : > { %v1496_v35 = vadd.f32 %v3605_v13, %v1495_v59 }
 0x1c0   : > { %2619 = vst.msk [vmem:[%s3612_s15 + $0x298] sm:$0xff] %vm1277_vm6, %v2066_v32 }
 0x1c1   : > { %v2214_v21 = vpop.f32.mrf.mxu3  ;;  %1545 = vst.msk [vmem:[%s3612_s15 + $0xa0] sm:$0xff] %vm1277_vm6, %v1496_v35 }
 0x1c2   : > { %v2215_v46 = vadd.f32 %v3605_v13, %v2214_v21 }
 0x1c3   : > { %v1916_v19 = vpop.f32.mrf.mxu1 }
 0x1c4   : > { %2673 = vst.msk [vmem:[%s3612_s15 + $0x398] sm:$0xff] %vm1277_vm6, %v2215_v46  ;;  %v1917_v60 = vadd.f32 %v3605_v13, %v1916_v19 }
 0x1c5   : > { %v2068_v48 = vpop.f32.mrf.mxu2 }
 0x1c6   : > { %2566 = vst.msk [vmem:[%s3612_s15 + $0x1a0] sm:$0xff] %vm1277_vm6, %v1917_v60  ;;  %v2069_v57 = vadd.f32 %v3605_v13, %v2068_v48  ;;  %v1497_v20 = vpop.f32.mrf.mxu0 }
 0x1c7   : > { %v1498_v0 = vadd.f32 %v3605_v13, %v1497_v20 }
 0x1c8   : > { %2620 = vst.msk [vmem:[%s3612_s15 + $0x2a0] sm:$0xff] %vm1277_vm6, %v2069_v57 }
 0x1c9   : > { %v2217_v10 = vpop.f32.mrf.mxu3  ;;  %1546 = vst.msk [vmem:[%s3612_s15 + $0xa8] sm:$0xff] %vm1277_vm6, %v1498_v0 }
 0x1ca   : > { %v2218_v8 = vadd.f32 %v3605_v13, %v2217_v10 }
 0x1cb   : > { %v1918_v55 = vpop.f32.mrf.mxu1 }
 0x1cc   : > { %2674 = vst.msk [vmem:[%s3612_s15 + $0x3a0] sm:$0xff] %vm1277_vm6, %v2218_v8  ;;  %v1919_v44 = vadd.f32 %v3605_v13, %v1918_v55 }
 0x1cd   : > { %v2070_v23 = vpop.f32.mrf.mxu2 }
 0x1ce   : > { %2567 = vst.msk [vmem:[%s3612_s15 + $0x1a8] sm:$0xff] %vm1277_vm6, %v1919_v44  ;;  %v2071_v11 = vadd.f32 %v3605_v13, %v2070_v23  ;;  %v1500_v12 = vpop.f32.mrf.mxu0 }
 0x1cf   : > { %v1501_v41 = vadd.f32 %v3605_v13, %v1500_v12 }
 0x1d0   : > { %2621 = vst.msk [vmem:[%s3612_s15 + $0x2a8] sm:$0xff] %vm1277_vm6, %v2071_v11 }
 0x1d1   : > { %v2219_v17 = vpop.f32.mrf.mxu3  ;;  %1547 = vst.msk [vmem:[%s3612_s15 + $0xb0] sm:$0xff] %vm1277_vm6, %v1501_v41 }
 0x1d2   : > { %v2220_v47 = vadd.f32 %v3605_v13, %v2219_v17 }
 0x1d3   : > { %v1921_v6 = vpop.f32.mrf.mxu1 }
 0x1d4   : > { %2675 = vst.msk [vmem:[%s3612_s15 + $0x3a8] sm:$0xff] %vm1277_vm6, %v2220_v47  ;;  %v1922_v2 = vadd.f32 %v3605_v13, %v1921_v6 }
 0x1d5   : > { %v2073_v52 = vpop.f32.mrf.mxu2 }
 0x1d6   : > { %2568 = vst.msk [vmem:[%s3612_s15 + $0x1b0] sm:$0xff] %vm1277_vm6, %v1922_v2  ;;  %v2074_v42 = vadd.f32 %v3605_v13, %v2073_v52  ;;  %v1502_v28 = vpop.f32.mrf.mxu0 }
 0x1d7   : > { %v1503_v49 = vadd.f32 %v3605_v13, %v1502_v28 }
 0x1d8   : > { %2622 = vst.msk [vmem:[%s3612_s15 + $0x2b0] sm:$0xff] %vm1277_vm6, %v2074_v42 }
 0x1d9   : > { %v2222_v29 = vpop.f32.mrf.mxu3  ;;  %1548 = vst.msk [vmem:[%s3612_s15 + $0xb8] sm:$0xff] %vm1277_vm6, %v1503_v49 }
 0x1da   : > { %v2223_v63 = vadd.f32 %v3605_v13, %v2222_v29 }
 0x1db   : > { %v1923_v51 = vpop.f32.mrf.mxu1 }
 0x1dc   : > { %2676 = vst.msk [vmem:[%s3612_s15 + $0x3b0] sm:$0xff] %vm1277_vm6, %v2223_v63  ;;  %v1924_v3 = vadd.f32 %v3605_v13, %v1923_v51 }
 0x1dd   : > { %v2075_v4 = vpop.f32.mrf.mxu2 }
 0x1de   : > { %2569 = vst.msk [vmem:[%s3612_s15 + $0x1b8] sm:$0xff] %vm1277_vm6, %v1924_v3  ;;  %v2076_v38 = vadd.f32 %v3605_v13, %v2075_v4  ;;  %v1505_v27 = vpop.f32.mrf.mxu0 }
 0x1df   : > { %v1506_v33 = vadd.f32 %v3605_v13, %v1505_v27 }
 0x1e0   : > { %2623 = vst.msk [vmem:[%s3612_s15 + $0x2b8] sm:$0xff] %vm1277_vm6, %v2076_v38 }
 0x1e1   : > { %v2224_v34 = vpop.f32.mrf.mxu3  ;;  %1549 = vst.msk [vmem:[%s3612_s15 + $0xc0] sm:$0xff] %vm1277_vm6, %v1506_v33 }
 0x1e2   : > { %v2225_v53 = vadd.f32 %v3605_v13, %v2224_v34 }
 0x1e3   : > { %v1926_v1 = vpop.f32.mrf.mxu1 }
 0x1e4   : > { %2677 = vst.msk [vmem:[%s3612_s15 + $0x3b8] sm:$0xff] %vm1277_vm6, %v2225_v53  ;;  %v1927_v50 = vadd.f32 %v3605_v13, %v1926_v1 }
 0x1e5   : > { %v2078_v9 = vpop.f32.mrf.mxu2 }
 0x1e6   : > { %2570 = vst.msk [vmem:[%s3612_s15 + $0x1c0] sm:$0xff] %vm1277_vm6, %v1927_v50  ;;  %v2079_v40 = vadd.f32 %v3605_v13, %v2078_v9  ;;  %v1507_v62 = vpop.f32.mrf.mxu0 }
 0x1e7   : > { %v1508_v25 = vadd.f32 %v3605_v13, %v1507_v62 }
 0x1e8   : > { %2624 = vst.msk [vmem:[%s3612_s15 + $0x2c0] sm:$0xff] %vm1277_vm6, %v2079_v40 }
 0x1e9   : > { %v2227_v45 = vpop.f32.mrf.mxu3  ;;  %1550 = vst.msk [vmem:[%s3612_s15 + $0xc8] sm:$0xff] %vm1277_vm6, %v1508_v25 }
 0x1ea   : > { %v2228_v14 = vadd.f32 %v3605_v13, %v2227_v45 }
 0x1eb   : > { %v1928_v37 = vpop.f32.mrf.mxu1 }
 0x1ec   : > { %2678 = vst.msk [vmem:[%s3612_s15 + $0x3c0] sm:$0xff] %vm1277_vm6, %v2228_v14  ;;  %v1929_v16 = vadd.f32 %v3605_v13, %v1928_v37 }
 0x1ed   : > { %v2080_v43 = vpop.f32.mrf.mxu2 }
 0x1ee   : > { %2571 = vst.msk [vmem:[%s3612_s15 + $0x1c8] sm:$0xff] %vm1277_vm6, %v1929_v16  ;;  %v2081_v36 = vadd.f32 %v3605_v13, %v2080_v43  ;;  %v1510_v58 = vpop.f32.mrf.mxu0 }
 0x1ef   : > { %v1511_v26 = vadd.f32 %v3605_v13, %v1510_v58 }
 0x1f0   : > { %2625 = vst.msk [vmem:[%s3612_s15 + $0x2c8] sm:$0xff] %vm1277_vm6, %v2081_v36 }
 0x1f1   : > { %v2229_v30 = vpop.f32.mrf.mxu3  ;;  %1551 = vst.msk [vmem:[%s3612_s15 + $0xd0] sm:$0xff] %vm1277_vm6, %v1511_v26 }
 0x1f2   : > { %v2230_v5 = vadd.f32 %v3605_v13, %v2229_v30 }
 0x1f3   : > { %v1931_v61 = vpop.f32.mrf.mxu1 }
 0x1f4   : > { %2679 = vst.msk [vmem:[%s3612_s15 + $0x3c8] sm:$0xff] %vm1277_vm6, %v2230_v5  ;;  %v1932_v18 = vadd.f32 %v3605_v13, %v1931_v61 }
 0x1f5   : > { %v2083_v54 = vpop.f32.mrf.mxu2 }
 0x1f6   : > { %2572 = vst.msk [vmem:[%s3612_s15 + $0x1d0] sm:$0xff] %vm1277_vm6, %v1932_v18  ;;  %v2084_v15 = vadd.f32 %v3605_v13, %v2083_v54  ;;  %v1512_v39 = vpop.f32.mrf.mxu0 }
 0x1f7   : > { %v1513_v24 = vadd.f32 %v3605_v13, %v1512_v39 }
 0x1f8   : > { %2626 = vst.msk [vmem:[%s3612_s15 + $0x2d0] sm:$0xff] %vm1277_vm6, %v2084_v15 }
 0x1f9   : > { %v2232_v7 = vpop.f32.mrf.mxu3  ;;  %1552 = vst.msk [vmem:[%s3612_s15 + $0xd8] sm:$0xff] %vm1277_vm6, %v1513_v24 }
 0x1fa   : > { %v2233_v22 = vadd.f32 %v3605_v13, %v2232_v7 }
 0x1fb   : > { %v1933_v31 = vpop.f32.mrf.mxu1 }
 0x1fc   : > { %2680 = vst.msk [vmem:[%s3612_s15 + $0x3d0] sm:$0xff] %vm1277_vm6, %v2233_v22  ;;  %v1934_v56 = vadd.f32 %v3605_v13, %v1933_v31 }
 0x1fd   : > { %v2085_v32 = vpop.f32.mrf.mxu2 }
 0x1fe   : > { %2573 = vst.msk [vmem:[%s3612_s15 + $0x1d8] sm:$0xff] %vm1277_vm6, %v1934_v56  ;;  %v2086_v59 = vadd.f32 %v3605_v13, %v2085_v32  ;;  %v1515_v35 = vpop.f32.mrf.mxu0 }
 0x1ff   : > { %v1516_v21 = vadd.f32 %v3605_v13, %v1515_v35 }
 0x200   : > { %2627 = vst.msk [vmem:[%s3612_s15 + $0x2d8] sm:$0xff] %vm1277_vm6, %v2086_v59 }
 0x201   : > { %v2234_v46 = vpop.f32.mrf.mxu3  ;;  %1553 = vst.msk [vmem:[%s3612_s15 + $0xe0] sm:$0xff] %vm1277_vm6, %v1516_v21 }
 0x202   : > { %v2235_v19 = vadd.f32 %v3605_v13, %v2234_v46 }
 0x203   : > { %v1936_v60 = vpop.f32.mrf.mxu1 }
 0x204   : > { %2681 = vst.msk [vmem:[%s3612_s15 + $0x3d8] sm:$0xff] %vm1277_vm6, %v2235_v19  ;;  %v1937_v48 = vadd.f32 %v3605_v13, %v1936_v60 }
 0x205   : > { %v2088_v57 = vpop.f32.mrf.mxu2 }
 0x206   : > { %2574 = vst.msk [vmem:[%s3612_s15 + $0x1e0] sm:$0xff] %vm1277_vm6, %v1937_v48  ;;  %v2089_v20 = vadd.f32 %v3605_v13, %v2088_v57  ;;  %v1517_v0 = vpop.f32.mrf.mxu0 }
 0x207   : > { %v1518_v10 = vadd.f32 %v3605_v13, %v1517_v0 }
 0x208   : > { %2628 = vst.msk [vmem:[%s3612_s15 + $0x2e0] sm:$0xff] %vm1277_vm6, %v2089_v20 }
 0x209   : > { %v2237_v8 = vpop.f32.mrf.mxu3  ;;  %1554 = vst.msk [vmem:[%s3612_s15 + $0xe8] sm:$0xff] %vm1277_vm6, %v1518_v10 }
 0x20a   : > { %v2238_v55 = vadd.f32 %v3605_v13, %v2237_v8 }
 0x20b   : > { %v1938_v44 = vpop.f32.mrf.mxu1 }
 0x20c   : > { %2682 = vst.msk [vmem:[%s3612_s15 + $0x3e0] sm:$0xff] %vm1277_vm6, %v2238_v55  ;;  %v1939_v23 = vadd.f32 %v3605_v13, %v1938_v44 }
 0x20d   : > { %v2090_v11 = vpop.f32.mrf.mxu2 }
 0x20e   : > { %2575 = vst.msk [vmem:[%s3612_s15 + $0x1e8] sm:$0xff] %vm1277_vm6, %v1939_v23  ;;  %v2091_v12 = vadd.f32 %v3605_v13, %v2090_v11  ;;  %v1520_v41 = vpop.f32.mrf.mxu0 }
 0x20f   : > { %v1521_v17 = vadd.f32 %v3605_v13, %v1520_v41 }
 0x210   : > { %2629 = vst.msk [vmem:[%s3612_s15 + $0x2e8] sm:$0xff] %vm1277_vm6, %v2091_v12 }
 0x211   : > { %v2239_v47 = vpop.f32.mrf.mxu3  ;;  %1555 = vst.msk [vmem:[%s3612_s15 + $0xf0] sm:$0xff] %vm1277_vm6, %v1521_v17 }
 0x212   : > { %v2240_v6 = vadd.f32 %v3605_v13, %v2239_v47 }
 0x213   : > { %v1941_v2 = vpop.f32.mrf.mxu1 }
 0x214   : > { %2683 = vst.msk [vmem:[%s3612_s15 + $0x3e8] sm:$0xff] %vm1277_vm6, %v2240_v6  ;;  %v1942_v52 = vadd.f32 %v3605_v13, %v1941_v2 }
 0x215   : > { %v2093_v42 = vpop.f32.mrf.mxu2 }
 0x216   : > { %2576 = vst.msk [vmem:[%s3612_s15 + $0x1f0] sm:$0xff] %vm1277_vm6, %v1942_v52  ;;  %v2094_v28 = vadd.f32 %v3605_v13, %v2093_v42  ;;  %v1522_v49 = vpop.f32.mrf.mxu0 }
 0x217   : > { %v1523_v29 = vadd.f32 %v3605_v13, %v1522_v49 }
 0x218   : > { %2630 = vst.msk [vmem:[%s3612_s15 + $0x2f0] sm:$0xff] %vm1277_vm6, %v2094_v28 }
 0x219   : > { %v2242_v63 = vpop.f32.mrf.mxu3  ;;  %1556 = vst.msk [vmem:[%s3612_s15 + $0xf8] sm:$0xff] %vm1277_vm6, %v1523_v29 }
 0x21a   : > { %v2243_v51 = vadd.f32 %v3605_v13, %v2242_v63 }
 0x21b   : > { %v1943_v3 = vpop.f32.mrf.mxu1 }
 0x21c   : > { %2684 = vst.msk [vmem:[%s3612_s15 + $0x3f0] sm:$0xff] %vm1277_vm6, %v2243_v51  ;;  %v1944_v4 = vadd.f32 %v3605_v13, %v1943_v3 }
 0x21d   : > { %v2095_v38 = vpop.f32.mrf.mxu2 }
 0x21e   : > { %2577 = vst.msk [vmem:[%s3612_s15 + $0x1f8] sm:$0xff] %vm1277_vm6, %v1944_v4  ;;  %v2096_v27 = vadd.f32 %v3605_v13, %v2095_v38 }
 0x220   : > { %2631 = vst.msk [vmem:[%s3612_s15 + $0x2f8] sm:$0xff] %vm1277_vm6, %v2096_v27 }
 0x221   : > { %v2244_v33 = vpop.f32.mrf.mxu3 }
 0x222   : > { %v2245_v34 = vadd.f32 %v3605_v13, %v2244_v33 }
 0x224   : > { %2685 = vst.msk [vmem:[%s3612_s15 + $0x3f8] sm:$0xff] %vm1277_vm6, %v2245_v34 }
 0x225 PF: > { %s15_s20 = sadd.s32 1, %s2763_s20   ;;  %s4119_s18 = smov %s2759_s19 }
 0x226   : > { %p12_p5 = scmp.ge.s32.totalorder %s15_s20, 4   ;;  %s4120_s19 = smov %s4122_s1 }
 0x228   :  { %14 = sbr.rel (!%p12_p5) target bundleno = 2 (0x2), region = 82 }

</bundles_post_ra>
